<compile_context>
chip_gen: v6e
topology: v6e:2x2x1
jax: 0.10.0
libtpu: 0.0.40
codegen_flags: <defaults>
</compile_context>

<pallas_src>
import functools
import math

import jax
import jax.numpy as jnp
from jax.experimental import pallas as pl
from jax.experimental.pallas import tpu as pltpu


# ----------------------------- tiling helpers ------------------------------

def _pick_tile(dim, target, align):
    """Largest tile <= target that divides dim and is align-aligned (or the full dim)."""
    if dim <= target:
        return dim
    t = (target // align) * align
    while t >= align:
        if dim % t == 0:
            return t
        t -= align
    return dim


def _pad_rows(x, mult=8):
    pad = (-x.shape[0]) % mult
    if pad:
        x = jnp.pad(x, ((0, pad), (0, 0)))
    return x, pad


# ----------------------------- Pallas kernels ------------------------------

def _matmul_bias_kernel(x_ref, w_ref, b_ref, o_ref, *, activation):
    """Single-K-step matmul: bias (+ optional ReLU) epilogue, no scratch needed."""
    y = jnp.dot(x_ref[...], w_ref[...], preferred_element_type=jnp.float32)
    y = y + b_ref[...].astype(jnp.float32)
    if activation == "relu":
        y = jnp.maximum(y, 0.0)
    o_ref[...] = y.astype(o_ref.dtype)


def _matmul_acc_kernel(x_ref, w_ref, b_ref, o_ref, acc_ref, *, activation):
    """Multi-K-step matmul with f32 VMEM accumulator, bias (+ReLU) epilogue."""
    @pl.when(pl.program_id(2) == 0)
    def _():
        acc_ref[...] = jnp.zeros_like(acc_ref)

    acc_ref[...] += jnp.dot(x_ref[...], w_ref[...],
                            preferred_element_type=jnp.float32)

    @pl.when(pl.program_id(2) == pl.num_programs(2) - 1)
    def _():
        y = acc_ref[...] + b_ref[...].astype(jnp.float32)
        if activation == "relu":
            y = jnp.maximum(y, 0.0)
        o_ref[...] = y.astype(o_ref.dtype)


def linear_pallas(x, w, b, activation=None, out_dtype=jnp.float32):
    """x: (M, K) bf16, w: (K, N) bf16, b: (N,) f32 -> (M, N) out_dtype."""
    M0, K = x.shape
    N = w.shape[1]
    x, pad = _pad_rows(x)
    M = x.shape[0]

    tm = _pick_tile(M, 256, 8)
    tn = _pick_tile(N, 256, 128)
    tk = _pick_tile(K, 512, 128)
    kt = K // tk

    if kt == 1:
        out = pl.pallas_call(
            functools.partial(_matmul_bias_kernel, activation=activation),
            out_shape=jax.ShapeDtypeStruct((M, N), out_dtype),
            grid=(M // tm, N // tn),
            in_specs=[
                pl.BlockSpec((tm, K), lambda i, j: (i, 0)),
                pl.BlockSpec((K, tn), lambda i, j: (0, j)),
                pl.BlockSpec((1, tn), lambda i, j: (0, j)),
            ],
            out_specs=pl.BlockSpec((tm, tn), lambda i, j: (i, j)),
            compiler_params=pltpu.CompilerParams(
                dimension_semantics=("parallel", "parallel")),
        )(x, w, b.reshape(1, N))
    else:
        out = pl.pallas_call(
            functools.partial(_matmul_acc_kernel, activation=activation),
            out_shape=jax.ShapeDtypeStruct((M, N), out_dtype),
            grid=(M // tm, N // tn, kt),
            in_specs=[
                pl.BlockSpec((tm, tk), lambda i, j, k: (i, k)),
                pl.BlockSpec((tk, tn), lambda i, j, k: (k, j)),
                pl.BlockSpec((1, tn), lambda i, j, k: (0, j)),
            ],
            out_specs=pl.BlockSpec((tm, tn), lambda i, j, k: (i, j)),
            scratch_shapes=[pltpu.VMEM((tm, tn), jnp.float32)],
            compiler_params=pltpu.CompilerParams(
                dimension_semantics=("parallel", "parallel", "arbitrary")),
        )(x, w, b.reshape(1, N))
    return out[:M0] if pad else out


def _add_ln_epilogue(y, g_ref, be_ref, o_ref, eps):
    mean = jnp.mean(y, axis=-1, keepdims=True)
    yc = y - mean
    var = jnp.mean(yc * yc, axis=-1, keepdims=True)
    ln = yc * jax.lax.rsqrt(var + eps)
    o_ref[...] = (ln * g_ref[...].astype(jnp.float32)
                  + be_ref[...].astype(jnp.float32)).astype(o_ref.dtype)


def _matmul_add_ln_single_kernel(x_ref, w_ref, b_ref, r_ref, g_ref, be_ref,
                                 o_ref, *, eps):
    """Single-K-step matmul fused with bias + residual add + LayerNorm epilogue."""
    y = jnp.dot(x_ref[...], w_ref[...], preferred_element_type=jnp.float32)
    y = y + b_ref[...].astype(jnp.float32) + r_ref[...].astype(jnp.float32)
    _add_ln_epilogue(y, g_ref, be_ref, o_ref, eps)


def _matmul_add_ln_acc_kernel(x_ref, w_ref, b_ref, r_ref, g_ref, be_ref,
                              o_ref, acc_ref, *, eps):
    """Multi-K-step matmul (f32 accumulator) fused with bias+residual+LayerNorm."""
    @pl.when(pl.program_id(1) == 0)
    def _():
        acc_ref[...] = jnp.zeros_like(acc_ref)

    acc_ref[...] += jnp.dot(x_ref[...], w_ref[...],
                            preferred_element_type=jnp.float32)

    @pl.when(pl.program_id(1) == pl.num_programs(1) - 1)
    def _():
        y = (acc_ref[...] + b_ref[...].astype(jnp.float32)
             + r_ref[...].astype(jnp.float32))
        _add_ln_epilogue(y, g_ref, be_ref, o_ref, eps)


def linear_add_ln_pallas(x, w, b, res, gamma, beta, eps=1e-5):
    """LayerNorm(res + x @ w + b), LN over last dim. x: (M, K) bf16, res: (M, N) f32."""
    M0, K = x.shape
    N = w.shape[1]
    x, pad = _pad_rows(x)
    res, _ = _pad_rows(res)
    M = x.shape[0]

    tm = _pick_tile(M, 256, 8)
    tk = _pick_tile(K, 512, 128)
    kt = K // tk

    if kt == 1:
        out = pl.pallas_call(
            functools.partial(_matmul_add_ln_single_kernel, eps=eps),
            out_shape=jax.ShapeDtypeStruct((M, N), jnp.float32),
            grid=(M // tm,),
            in_specs=[
                pl.BlockSpec((tm, K), lambda i: (i, 0)),
                pl.BlockSpec((K, N), lambda i: (0, 0)),
                pl.BlockSpec((1, N), lambda i: (0, 0)),
                pl.BlockSpec((tm, N), lambda i: (i, 0)),
                pl.BlockSpec((1, N), lambda i: (0, 0)),
                pl.BlockSpec((1, N), lambda i: (0, 0)),
            ],
            out_specs=pl.BlockSpec((tm, N), lambda i: (i, 0)),
            compiler_params=pltpu.CompilerParams(
                dimension_semantics=("parallel",)),
        )(x, w, b.reshape(1, N), res, gamma.reshape(1, N), beta.reshape(1, N))
    else:
        out = pl.pallas_call(
            functools.partial(_matmul_add_ln_acc_kernel, eps=eps),
            out_shape=jax.ShapeDtypeStruct((M, N), jnp.float32),
            grid=(M // tm, kt),
            in_specs=[
                pl.BlockSpec((tm, tk), lambda i, k: (i, k)),
                pl.BlockSpec((tk, N), lambda i, k: (k, 0)),
                pl.BlockSpec((1, N), lambda i, k: (0, 0)),
                pl.BlockSpec((tm, N), lambda i, k: (i, 0)),
                pl.BlockSpec((1, N), lambda i, k: (0, 0)),
                pl.BlockSpec((1, N), lambda i, k: (0, 0)),
            ],
            out_specs=pl.BlockSpec((tm, N), lambda i, k: (i, 0)),
            scratch_shapes=[pltpu.VMEM((tm, N), jnp.float32)],
            compiler_params=pltpu.CompilerParams(
                dimension_semantics=("parallel", "arbitrary")),
        )(x, w, b.reshape(1, N), res, gamma.reshape(1, N), beta.reshape(1, N))
    return out[:M0] if pad else out


def _attn_kernel(q_ref, k_ref, v_ref, o_ref, *, scale, causal):
    """All heads of one batch element per grid step; f32 softmax, bf16 matmul operands."""
    q = q_ref[...]                                   # (H, Sq, hd)
    k = k_ref[...]                                   # (H, Sk, hd)
    v = v_ref[...]                                   # (H, Sk, hd)
    s = jnp.einsum("hqd,hkd->hqk", q, k,
                   preferred_element_type=jnp.float32) * scale
    if causal:
        row = jax.lax.broadcasted_iota(jnp.int32, s.shape, 1)
        col = jax.lax.broadcasted_iota(jnp.int32, s.shape, 2)
        s = jnp.where(row >= col, s, jnp.float32(-1e30))
    s = s - jnp.max(s, axis=-1, keepdims=True)
    p = jnp.exp(s)
    inv = pl.reciprocal(jnp.sum(p, axis=-1, keepdims=True), approx=True)
    p = p * inv
    o = jnp.einsum("hqk,hkd->hqd", p.astype(v.dtype), v,
                   preferred_element_type=jnp.float32)
    o_ref[...] = o.astype(o_ref.dtype)


def attention_pallas(q, k, v, *, nhead, scale, causal):
    """q: (B*H, Sq, hd), k/v: (B*H, Sk, hd); grid over batch, all heads per step."""
    BH, Sq, hd = q.shape
    Sk = k.shape[1]
    B = BH // nhead
    return pl.pallas_call(
        functools.partial(_attn_kernel, scale=scale, causal=causal),
        out_shape=jax.ShapeDtypeStruct((BH, Sq, hd), q.dtype),
        grid=(B,),
        in_specs=[
            pl.BlockSpec((nhead, Sq, hd), lambda b: (b, 0, 0)),
            pl.BlockSpec((nhead, Sk, hd), lambda b: (b, 0, 0)),
            pl.BlockSpec((nhead, Sk, hd), lambda b: (b, 0, 0)),
        ],
        out_specs=pl.BlockSpec((nhead, Sq, hd), lambda b: (b, 0, 0)),
        compiler_params=pltpu.CompilerParams(dimension_semantics=("parallel",)),
    )(q, k, v)


# ----------------------------- model wrapper --------------------------------

def _split_heads(t, B, S, nhead, hd):
    # (B*S, nhead*hd) -> (B*nhead, S, hd)
    # TODO(synk): wrapper-side transpose still materializes an XLA copy; a fully
    # transpose-free head layout would need an in-kernel minor-dim reshape.
    return t.reshape(B, S, nhead, hd).transpose(0, 2, 1, 3).reshape(B * nhead, S, hd)


def _merge_heads(t, B, S, nhead, hd):
    # (B*nhead, S, hd) -> (B*S, nhead*hd)
    return t.reshape(B, nhead, S, hd).transpose(0, 2, 1, 3).reshape(B * S, nhead * hd)


def self_attention(x_bf, p, nhead):
    """x_bf: (B, S, D) bf16 -> (B*S, D) bf16 (before output projection)."""
    B, S, D = x_bf.shape
    hd = D // nhead
    scale = 1.0 / math.sqrt(hd)
    qkv = linear_pallas(x_bf.reshape(B * S, D), p["w_qkv"], p["b_qkv"],
                        out_dtype=jnp.bfloat16)                 # (B*S, 3D)
    q, k, v = jnp.split(qkv, 3, axis=-1)
    qh = _split_heads(q, B, S, nhead, hd)
    kh = _split_heads(k, B, S, nhead, hd)
    vh = _split_heads(v, B, S, nhead, hd)
    oh = attention_pallas(qh, kh, vh, nhead=nhead, scale=scale, causal=True)
    return _merge_heads(oh, B, S, nhead, hd)


def cross_attention(x_bf, mem_bf, p, nhead):
    """x_bf: (B, S, D) bf16, mem_bf: (B, Sm, D) bf16 -> (B*S, D) bf16."""
    B, S, D = x_bf.shape
    Sm = mem_bf.shape[1]
    hd = D // nhead
    scale = 1.0 / math.sqrt(hd)
    q = linear_pallas(x_bf.reshape(B * S, D), p["w_q"], p["b_q"],
                      out_dtype=jnp.bfloat16)
    kv = linear_pallas(mem_bf.reshape(B * Sm, D), p["w_kv"], p["b_kv"],
                       out_dtype=jnp.bfloat16)                  # (B*Sm, 2D)
    k, v = jnp.split(kv, 2, axis=-1)
    qh = _split_heads(q, B, S, nhead, hd)
    kh = _split_heads(k, B, Sm, nhead, hd)
    vh = _split_heads(v, B, Sm, nhead, hd)
    oh = attention_pallas(qh, kh, vh, nhead=nhead, scale=scale, causal=False)
    return _merge_heads(oh, B, S, nhead, hd)


def decoder_layer(x, mem_bf, p, nhead):
    """Post-norm TransformerDecoderLayer. x: (B, S, D) f32, mem_bf: (B, Sm, D) bf16."""
    B, S, D = x.shape
    M = B * S
    x2 = x.reshape(M, D)                         # f32 residual
    x_bf = x.astype(jnp.bfloat16)

    # self attention: fused QKV proj -> attention -> fused outproj+add+LN
    sa = self_attention(x_bf, p["self_attn"], nhead)
    x2 = linear_add_ln_pallas(sa, p["self_attn"]["wo"], p["self_attn"]["bo"],
                              x2, p["ln1_g"], p["ln1_b"])

    # cross attention
    x_bf = x2.astype(jnp.bfloat16).reshape(B, S, D)
    ca = cross_attention(x_bf, mem_bf, p["cross_attn"], nhead)
    x2 = linear_add_ln_pallas(ca, p["cross_attn"]["wo"], p["cross_attn"]["bo"],
                              x2, p["ln2_g"], p["ln2_b"])

    # feed-forward: fused bias+ReLU matmul, then fused matmul+add+LN
    x_bf2 = x2.astype(jnp.bfloat16)
    h = linear_pallas(x_bf2, p["w1"], p["b1"], activation="relu",
                      out_dtype=jnp.bfloat16)
    x2 = linear_add_ln_pallas(h, p["w2"], p["b2"], x2, p["ln3_g"], p["ln3_b"])
    return x2.reshape(B, S, D)


def decoder_forward(params, tgt_input, memory, nhead, vocab_size):
    """tgt_input: (B, S) int32, memory: (B, H, W, D)."""
    B, S = tgt_input.shape
    D = params["token_embedding"].shape[1]

    # glue: embedding gather + positional embedding (no clean Pallas gather here)
    # TODO(synk): the per-token embedding gather stays as jnp.take glue; a Pallas
    # row-gather via PrefetchScalarGridSpec + pl.Element would add per-step DMA
    # overhead at these tiny shapes.
    tgt_emb = (jnp.take(params["token_embedding"], tgt_input, axis=0)
               + params["pos_embedding"][:, :S, :]).astype(jnp.float32)

    # glue: flatten memory spatial dims
    mem_bf = memory.reshape(memory.shape[0], -1, memory.shape[-1]).astype(jnp.bfloat16)

    x = tgt_emb
    for lp in params["layers"]:
        x = decoder_layer(x, mem_bf, lp, nhead)

    # output projection: N padded to multiple of 128 (lane-dense stores), slice back
    x_bf = x.reshape(B * S, D).astype(jnp.bfloat16)
    logits = linear_pallas(x_bf, params["out_w"], params["out_b"],
                           out_dtype=jnp.float32)
    logits = logits[:, :vocab_size]
    return logits.reshape(B, S, vocab_size)


# ----------------------------- parameter init -------------------------------

def init_params(key, vocab_size, d_model, nhead, num_layers, max_len):
    def nrm(k, shape, std=0.02):
        return std * jax.random.normal(k, shape, dtype=jnp.float32)

    keys = jax.random.split(key, 3 + num_layers)
    params = {
        "token_embedding": nrm(keys[0], (vocab_size, d_model)),
        "pos_embedding": nrm(keys[1], (1, max_len * 2, d_model)),
        "out_w": nrm(keys[2], (d_model, vocab_size)),
        "out_b": jnp.zeros((vocab_size,), jnp.float32),
        "layers": [],
    }
    d_ff = d_model * 4
    for li in range(num_layers):
        lk = jax.random.split(keys[3 + li], 7)
        params["layers"].append({
            "self_attn": {
                "w_qkv": nrm(lk[0], (d_model, 3 * d_model)),   # fused Wq|Wk|Wv
                "b_qkv": jnp.zeros((3 * d_model,), jnp.float32),
                "wo": nrm(lk[1], (d_model, d_model)),
                "bo": jnp.zeros((d_model,), jnp.float32),
            },
            "cross_attn": {
                "w_q": nrm(lk[2], (d_model, d_model)),
                "b_q": jnp.zeros((d_model,), jnp.float32),
                "w_kv": nrm(lk[3], (d_model, 2 * d_model)),    # fused Wk|Wv
                "b_kv": jnp.zeros((2 * d_model,), jnp.float32),
                "wo": nrm(lk[4], (d_model, d_model)),
                "bo": jnp.zeros((d_model,), jnp.float32),
            },
            "w1": nrm(lk[5], (d_model, d_ff)),
            "b1": jnp.zeros((d_ff,), jnp.float32),
            "w2": nrm(lk[6], (d_ff, d_model)),
            "b2": jnp.zeros((d_model,), jnp.float32),
            "ln1_g": jnp.ones((d_model,), jnp.float32),
            "ln1_b": jnp.zeros((d_model,), jnp.float32),
            "ln2_g": jnp.ones((d_model,), jnp.float32),
            "ln2_b": jnp.zeros((d_model,), jnp.float32),
            "ln3_g": jnp.ones((d_model,), jnp.float32),
            "ln3_b": jnp.zeros((d_model,), jnp.float32),
        })
    return params


def prepare_params(params):
    """Cast MXU weights to bf16 (f32 accumulation in-kernel) and pad out_w N to 128x."""
    def bf(x):
        return x.astype(jnp.bfloat16)

    _, V = params["out_w"].shape
    Vp = ((V + 127) // 128) * 128
    out_w = jnp.pad(params["out_w"], ((0, 0), (0, Vp - V)))
    out_b = jnp.pad(params["out_b"], ((0, Vp - V),))

    prepped = {
        "token_embedding": params["token_embedding"],
        "pos_embedding": params["pos_embedding"],
        "out_w": bf(out_w),
        "out_b": out_b,
        "layers": [],
    }
    for lp in params["layers"]:
        prepped["layers"].append({
            "self_attn": {"w_qkv": bf(lp["self_attn"]["w_qkv"]),
                          "b_qkv": lp["self_attn"]["b_qkv"],
                          "wo": bf(lp["self_attn"]["wo"]),
                          "bo": lp["self_attn"]["bo"]},
            "cross_attn": {"w_q": bf(lp["cross_attn"]["w_q"]),
                           "b_q": lp["cross_attn"]["b_q"],
                           "w_kv": bf(lp["cross_attn"]["w_kv"]),
                           "b_kv": lp["cross_attn"]["b_kv"],
                           "wo": bf(lp["cross_attn"]["wo"]),
                           "bo": lp["cross_attn"]["bo"]},
            "w1": bf(lp["w1"]), "b1": lp["b1"],
            "w2": bf(lp["w2"]), "b2": lp["b2"],
            "ln1_g": lp["ln1_g"], "ln1_b": lp["ln1_b"],
            "ln2_g": lp["ln2_g"], "ln2_b": lp["ln2_b"],
            "ln3_g": lp["ln3_g"], "ln3_b": lp["ln3_b"],
        })
    return prepped


# ----------------------------- main ------------------------------------------

if __name__ == "__main__":
    vocab_size = 50
    d_model = 128         # lane-friendly channel dim (head_dim = 16)
    nhead = 8
    num_layers = 2
    max_len = 16

    B, S = 2, 8
    Hm, Wm = 4, 4         # memory spatial dims -> memory seq = 16

    key = jax.random.PRNGKey(0)
    k_params, k_tok, k_mem = jax.random.split(key, 3)

    params = prepare_params(
        init_params(k_params, vocab_size, d_model, nhead, num_layers, max_len))
    tgt_input = jax.random.randint(k_tok, (B, S), 0, vocab_size, dtype=jnp.int32)
    memory = jax.random.normal(k_mem, (B, Hm, Wm, d_model), dtype=jnp.float32)

    fwd = jax.jit(functools.partial(decoder_forward, nhead=nhead,
                                    vocab_size=vocab_size))
    logits = fwd(params, tgt_input, memory)
    jax.block_until_ready(logits)

    assert logits.shape == (B, S, vocab_size)
    assert bool(jnp.all(jnp.isfinite(logits)))
    # TODO(synk): dropout is treated as identity (eval mode); training-time dropout RNG not reproduced.
    print("KERNEL_OK")
</pallas_src>

<mosaic_0001>
module attributes {stable_mosaic.version = 11 : i64} {
  func.func @_matmul_bias_kernel(%arg0: i32, %arg1: i32, %arg2: memref<16x128xbf16, #tpu.memory_space<vmem>>, %arg3: memref<128x128xbf16, #tpu.memory_space<vmem>>, %arg4: memref<1x128xf32, #tpu.memory_space<vmem>>, %arg5: memref<16x128xbf16, #tpu.memory_space<vmem>>) attributes {dimension_semantics = [#tpu.dimension_semantics<parallel>, #tpu.dimension_semantics<parallel>], iteration_bounds = array<i64: 1, 3>, scalar_prefetch = 0 : i64, scratch_operands = 0 : i64, tpu.core_type = #tpu.core_type<tc>, window_params = [{transform_indices = @transform_0, window_bounds = array<i64: 16, 128>}, {transform_indices = @transform_1, window_bounds = array<i64: 128, 128>}, {transform_indices = @transform_2, window_bounds = array<i64: 1, 128>}, {transform_indices = @transform_3, window_bounds = array<i64: 16, 128>}]} {
    %c0 = arith.constant 0 : index
    %c0_0 = arith.constant 0 : index
    %0 = vector.load %arg2[%c0, %c0_0] : memref<16x128xbf16, #tpu.memory_space<vmem>>, vector<16x128xbf16>
    %c0_1 = arith.constant 0 : index
    %c0_2 = arith.constant 0 : index
    %1 = vector.load %arg3[%c0_1, %c0_2] : memref<128x128xbf16, #tpu.memory_space<vmem>>, vector<128x128xbf16>
    %cst = arith.constant dense<0.000000e+00> : vector<16x128xf32>
    %2 = tpu.matmul %0, %1, %cst {dimension_numbers = #tpu.dot_dimension_numbers<[1], [0], [0], [1], [0, 0, 1, 1], [], []>} : vector<16x128xbf16>, vector<128x128xbf16>, vector<16x128xf32> -> vector<16x128xf32>
    %c0_3 = arith.constant 0 : index
    %c0_4 = arith.constant 0 : index
    %3 = vector.load %arg4[%c0_3, %c0_4] : memref<1x128xf32, #tpu.memory_space<vmem>>, vector<1x128xf32>
    %4 = vector.broadcast %3 : vector<1x128xf32> to vector<16x128xf32>
    %5 = arith.addf %2, %4 : vector<16x128xf32>
    %6 = arith.truncf %5 : vector<16x128xf32> to vector<16x128xbf16>
    %c0_5 = arith.constant 0 : index
    %c0_6 = arith.constant 0 : index
    %7 = vector.load %arg5[%c0_5, %c0_6] : memref<16x128xbf16, #tpu.memory_space<vmem>>, vector<16x128xbf16>
    tpu.vector_store %arg5[%c0_5, %c0_6], %6 {strides = array<i32>} : memref<16x128xbf16, #tpu.memory_space<vmem>>, vector<16x128xbf16>,
    return
  }
  func.func @transform_0(%arg0: i32, %arg1: i32) -> (i32, i32) {
    %c0_i32 = arith.constant 0 : i32
    %c0_i32_0 = arith.constant 0 : i32
    return %arg0, %c0_i32 : i32, i32
  }
  func.func @transform_1(%arg0: i32, %arg1: i32) -> (i32, i32) {
    %c0_i32 = arith.constant 0 : i32
    %c0_i32_0 = arith.constant 0 : i32
    return %c0_i32, %arg1 : i32, i32
  }
  func.func @transform_2(%arg0: i32, %arg1: i32) -> (i32, i32) {
    %c0_i32 = arith.constant 0 : i32
    %c0_i32_0 = arith.constant 0 : i32
    return %c0_i32, %arg1 : i32, i32
  }
  func.func @transform_3(%arg0: i32, %arg1: i32) -> (i32, i32) {
    %c0_i32 = arith.constant 0 : i32
    return %arg0, %arg1 : i32, i32
  }
}

module attributes {stable_mosaic.version = 11 : i64} {
  func.func @_attn_kernel(%arg0: i32, %arg1: memref<8x8x16xbf16, #tpu.memory_space<vmem>>, %arg2: memref<8x8x16xbf16, #tpu.memory_space<vmem>>, %arg3: memref<8x8x16xbf16, #tpu.memory_space<vmem>>, %arg4: memref<8x8x16xbf16, #tpu.memory_space<vmem>>) attributes {dimension_semantics = [#tpu.dimension_semantics<parallel>], iteration_bounds = array<i64: 2>, scalar_prefetch = 0 : i64, scratch_operands = 0 : i64, tpu.core_type = #tpu.core_type<tc>, window_params = [{transform_indices = @transform_0, window_bounds = array<i64: 8, 8, 16>}, {transform_indices = @transform_1, window_bounds = array<i64: 8, 8, 16>}, {transform_indices = @transform_2, window_bounds = array<i64: 8, 8, 16>}, {transform_indices = @transform_3, window_bounds = array<i64: 8, 8, 16>}]} {
    %c0 = arith.constant 0 : index
    %c0_0 = arith.constant 0 : index
    %c0_1 = arith.constant 0 : index
    %0 = vector.load %arg1[%c0, %c0_0, %c0_1] : memref<8x8x16xbf16, #tpu.memory_space<vmem>>, vector<8x8x16xbf16>
    %c0_2 = arith.constant 0 : index
    %c0_3 = arith.constant 0 : index
    %c0_4 = arith.constant 0 : index
    %1 = vector.load %arg2[%c0_2, %c0_3, %c0_4] : memref<8x8x16xbf16, #tpu.memory_space<vmem>>, vector<8x8x16xbf16>
    %c0_5 = arith.constant 0 : index
    %c0_6 = arith.constant 0 : index
    %c0_7 = arith.constant 0 : index
    %2 = vector.load %arg3[%c0_5, %c0_6, %c0_7] : memref<8x8x16xbf16, #tpu.memory_space<vmem>>, vector<8x8x16xbf16>
    "tpu.trace_start"() <{level = 10 : i32, message = "hqd,hkd->hqk"}> : () -> ()
    %cst = arith.constant dense<0.000000e+00> : vector<8x8x8xf32>
    %3 = tpu.matmul %0, %1, %cst {dimension_numbers = #tpu.dot_dimension_numbers<[2], [2], [1], [1], [0, 0, 0, 1, 1, 1], [0], [0]>} : vector<8x8x16xbf16>, vector<8x8x16xbf16>, vector<8x8x8xf32> -> vector<8x8x8xf32>
    "tpu.trace_stop"() : () -> ()
    %cst_8 = arith.constant 2.500000e-01 : f32
    %4 = vector.broadcast %cst_8 : f32 to vector<8x8x8xf32>
    %5 = arith.mulf %3, %4 : vector<8x8x8xf32>
    %6 = tpu.iota {dimensions = array<i32: 1>} : vector<8x8x8xi32>
    %7 = tpu.iota {dimensions = array<i32: 2>} : vector<8x8x8xi32>
    %8 = arith.cmpi sge, %6, %7 : vector<8x8x8xi32>
    %cst_9 = arith.constant -1.000000e+30 : f32
    %9 = vector.broadcast %cst_9 : f32 to vector<8x8x8xf32>
    %10 = arith.select %8, %5, %9 : vector<8x8x8xi1>, vector<8x8x8xf32>
    %cst_10 = arith.constant dense<0xFF800000> : vector<8x8xf32>
    %11 = vector.multi_reduction <maximumf>, %10, %cst_10 [2] : vector<8x8x8xf32> to vector<8x8xf32>
    %12 = vector.shape_cast %11 : vector<8x8xf32> to vector<8x8x1xf32>
    %13 = vector.broadcast %12 : vector<8x8x1xf32> to vector<8x8x8xf32>
    %14 = arith.subf %10, %13 : vector<8x8x8xf32>
    %15 = math.exp %14 : vector<8x8x8xf32>
    %cst_11 = arith.constant dense<0.000000e+00> : vector<8x8xf32>
    %16 = vector.multi_reduction <add>, %15, %cst_11 [2] : vector<8x8x8xf32> to vector<8x8xf32>
    %17 = vector.shape_cast %16 : vector<8x8xf32> to vector<8x8x1xf32>
    %18 = tpu.reciprocal %17 {approx = true} : vector<8x8x1xf32> -> vector<8x8x1xf32>
    %19 = vector.broadcast %18 : vector<8x8x1xf32> to vector<8x8x8xf32>
    %20 = arith.mulf %15, %19 : vector<8x8x8xf32>
    %21 = arith.truncf %20 : vector<8x8x8xf32> to vector<8x8x8xbf16>
    "tpu.trace_start"() <{level = 10 : i32, message = "hqk,hkd->hqd"}> : () -> ()
    %cst_12 = arith.constant dense<0.000000e+00> : vector<8x8x16xf32>
    %22 = tpu.matmul %21, %2, %cst_12 {dimension_numbers = #tpu.dot_dimension_numbers<[2], [1], [1], [2], [0, 0, 0, 1, 1, 2], [0], [0]>} : vector<8x8x8xbf16>, vector<8x8x16xbf16>, vector<8x8x16xf32> -> vector<8x8x16xf32>
    "tpu.trace_stop"() : () -> ()
    %23 = arith.truncf %22 : vector<8x8x16xf32> to vector<8x8x16xbf16>
    %c0_13 = arith.constant 0 : index
    %c0_14 = arith.constant 0 : index
    %c0_15 = arith.constant 0 : index
    %24 = vector.load %arg4[%c0_13, %c0_14, %c0_15] : memref<8x8x16xbf16, #tpu.memory_space<vmem>>, vector<8x8x16xbf16>
    tpu.vector_store %arg4[%c0_13, %c0_14, %c0_15], %23 {strides = array<i32>} : memref<8x8x16xbf16, #tpu.memory_space<vmem>>, vector<8x8x16xbf16>,
    return
  }
  func.func @transform_0(%arg0: i32) -> (i32, i32, i32) {
    %c0_i32 = arith.constant 0 : i32
    %c0_i32_0 = arith.constant 0 : i32
    %c0_i32_1 = arith.constant 0 : i32
    return %arg0, %c0_i32, %c0_i32_0 : i32, i32, i32
  }
  func.func @transform_1(%arg0: i32) -> (i32, i32, i32) {
    %c0_i32 = arith.constant 0 : i32
    %c0_i32_0 = arith.constant 0 : i32
    %c0_i32_1 = arith.constant 0 : i32
    return %arg0, %c0_i32, %c0_i32_0 : i32, i32, i32
  }
  func.func @transform_2(%arg0: i32) -> (i32, i32, i32) {
    %c0_i32 = arith.constant 0 : i32
    %c0_i32_0 = arith.constant 0 : i32
    %c0_i32_1 = arith.constant 0 : i32
    return %arg0, %c0_i32, %c0_i32_0 : i32, i32, i32
  }
  func.func @transform_3(%arg0: i32) -> (i32, i32, i32) {
    %c0_i32 = arith.constant 0 : i32
    %c0_i32_0 = arith.constant 0 : i32
    %c0_i32_1 = arith.constant 0 : i32
    return %arg0, %c0_i32, %c0_i32_0 : i32, i32, i32
  }
}

module attributes {stable_mosaic.version = 11 : i64} {
  func.func @_matmul_add_ln_single_kernel(%arg0: i32, %arg1: memref<16x128xbf16, #tpu.memory_space<vmem>>, %arg2: memref<128x128xbf16, #tpu.memory_space<vmem>>, %arg3: memref<1x128xf32, #tpu.memory_space<vmem>>, %arg4: memref<16x128xf32, #tpu.memory_space<vmem>>, %arg5: memref<1x128xf32, #tpu.memory_space<vmem>>, %arg6: memref<1x128xf32, #tpu.memory_space<vmem>>, %arg7: memref<16x128xf32, #tpu.memory_space<vmem>>) attributes {dimension_semantics = [#tpu.dimension_semantics<parallel>], iteration_bounds = array<i64: 1>, scalar_prefetch = 0 : i64, scratch_operands = 0 : i64, tpu.core_type = #tpu.core_type<tc>, window_params = [{transform_indices = @transform_0, window_bounds = array<i64: 16, 128>}, {pipeline_mode = #tpu.pipeline_mode<synchronous>, transform_indices = @transform_1, window_bounds = array<i64: 128, 128>}, {pipeline_mode = #tpu.pipeline_mode<synchronous>, transform_indices = @transform_2, window_bounds = array<i64: 1, 128>}, {transform_indices = @transform_3, window_bounds = array<i64: 16, 128>}, {pipeline_mode = #tpu.pipeline_mode<synchronous>, transform_indices = @transform_4, window_bounds = array<i64: 1, 128>}, {pipeline_mode = #tpu.pipeline_mode<synchronous>, transform_indices = @transform_5, window_bounds = array<i64: 1, 128>}, {transform_indices = @transform_6, window_bounds = array<i64: 16, 128>}]} {
    %c0 = arith.constant 0 : index
    %c0_0 = arith.constant 0 : index
    %0 = vector.load %arg1[%c0, %c0_0] : memref<16x128xbf16, #tpu.memory_space<vmem>>, vector<16x128xbf16>
    %c0_1 = arith.constant 0 : index
    %c0_2 = arith.constant 0 : index
    %1 = vector.load %arg2[%c0_1, %c0_2] : memref<128x128xbf16, #tpu.memory_space<vmem>>, vector<128x128xbf16>
    %cst = arith.constant dense<0.000000e+00> : vector<16x128xf32>
    %2 = tpu.matmul %0, %1, %cst {dimension_numbers = #tpu.dot_dimension_numbers<[1], [0], [0], [1], [0, 0, 1, 1], [], []>} : vector<16x128xbf16>, vector<128x128xbf16>, vector<16x128xf32> -> vector<16x128xf32>
    %c0_3 = arith.constant 0 : index
    %c0_4 = arith.constant 0 : index
    %3 = vector.load %arg3[%c0_3, %c0_4] : memref<1x128xf32, #tpu.memory_space<vmem>>, vector<1x128xf32>
    %4 = vector.broadcast %3 : vector<1x128xf32> to vector<16x128xf32>
    %5 = arith.addf %2, %4 : vector<16x128xf32>
    %c0_5 = arith.constant 0 : index
    %c0_6 = arith.constant 0 : index
    %6 = vector.load %arg4[%c0_5, %c0_6] : memref<16x128xf32, #tpu.memory_space<vmem>>, vector<16x128xf32>
    %7 = arith.addf %5, %6 : vector<16x128xf32>
    %cst_7 = arith.constant dense<0.000000e+00> : vector<16xf32>
    %8 = vector.multi_reduction <add>, %7, %cst_7 [1] : vector<16x128xf32> to vector<16xf32>
    %9 = vector.shape_cast %8 : vector<16xf32> to vector<16x1xf32>
    %cst_8 = arith.constant 1.280000e+02 : f32
    %10 = vector.broadcast %cst_8 : f32 to vector<16x1xf32>
    %11 = arith.divf %9, %10 : vector<16x1xf32>
    %12 = vector.broadcast %11 : vector<16x1xf32> to vector<16x128xf32>
    %13 = arith.subf %7, %12 : vector<16x128xf32>
    %14 = arith.mulf %13, %13 : vector<16x128xf32>
    %cst_9 = arith.constant dense<0.000000e+00> : vector<16xf32>
    %15 = vector.multi_reduction <add>, %14, %cst_9 [1] : vector<16x128xf32> to vector<16xf32>
    %16 = vector.shape_cast %15 : vector<16xf32> to vector<16x1xf32>
    %cst_10 = arith.constant 1.280000e+02 : f32
    %17 = vector.broadcast %cst_10 : f32 to vector<16x1xf32>
    %18 = arith.divf %16, %17 : vector<16x1xf32>
    %cst_11 = arith.constant 9.99999974E-6 : f32
    %19 = vector.broadcast %cst_11 : f32 to vector<16x1xf32>
    %20 = arith.addf %18, %19 : vector<16x1xf32>
    %21 = math.rsqrt %20 : vector<16x1xf32>
    %22 = vector.broadcast %21 : vector<16x1xf32> to vector<16x128xf32>
    %23 = arith.mulf %13, %22 : vector<16x128xf32>
    %c0_12 = arith.constant 0 : index
    %c0_13 = arith.constant 0 : index
    %24 = vector.load %arg5[%c0_12, %c0_13] : memref<1x128xf32, #tpu.memory_space<vmem>>, vector<1x128xf32>
    %25 = vector.broadcast %24 : vector<1x128xf32> to vector<16x128xf32>
    %26 = arith.mulf %23, %25 : vector<16x128xf32>
    %c0_14 = arith.constant 0 : index
    %c0_15 = arith.constant 0 : index
    %27 = vector.load %arg6[%c0_14, %c0_15] : memref<1x128xf32, #tpu.memory_space<vmem>>, vector<1x128xf32>
    %28 = vector.broadcast %27 : vector<1x128xf32> to vector<16x128xf32>
    %29 = arith.addf %26, %28 : vector<16x128xf32>
    %c0_16 = arith.constant 0 : index
    %c0_17 = arith.constant 0 : index
    %30 = vector.load %arg7[%c0_16, %c0_17] : memref<16x128xf32, #tpu.memory_space<vmem>>, vector<16x128xf32>
    tpu.vector_store %arg7[%c0_16, %c0_17], %29 {strides = array<i32>} : memref<16x128xf32, #tpu.memory_space<vmem>>, vector<16x128xf32>,
    return
  }
  func.func @transform_0(%arg0: i32) -> (i32, i32) {
    %c0_i32 = arith.constant 0 : i32
    %c0_i32_0 = arith.constant 0 : i32
    return %arg0, %c0_i32 : i32, i32
  }
  func.func @transform_1(%arg0: i32) -> (i32, i32) {
    %c0_i32 = arith.constant 0 : i32
    %c0_i32_0 = arith.constant 0 : i32
    %c0_i32_1 = arith.constant 0 : i32
    return %c0_i32, %c0_i32_0 : i32, i32
  }
  func.func @transform_2(%arg0: i32) -> (i32, i32) {
    %c0_i32 = arith.constant 0 : i32
    %c0_i32_0 = arith.constant 0 : i32
    %c0_i32_1 = arith.constant 0 : i32
    return %c0_i32, %c0_i32_0 : i32, i32
  }
  func.func @transform_3(%arg0: i32) -> (i32, i32) {
    %c0_i32 = arith.constant 0 : i32
    %c0_i32_0 = arith.constant 0 : i32
    return %arg0, %c0_i32 : i32, i32
  }
  func.func @transform_4(%arg0: i32) -> (i32, i32) {
    %c0_i32 = arith.constant 0 : i32
    %c0_i32_0 = arith.constant 0 : i32
    %c0_i32_1 = arith.constant 0 : i32
    return %c0_i32, %c0_i32_0 : i32, i32
  }
  func.func @transform_5(%arg0: i32) -> (i32, i32) {
    %c0_i32 = arith.constant 0 : i32
    %c0_i32_0 = arith.constant 0 : i32
    %c0_i32_1 = arith.constant 0 : i32
    return %c0_i32, %c0_i32_0 : i32, i32
  }
  func.func @transform_6(%arg0: i32) -> (i32, i32) {
    %c0_i32 = arith.constant 0 : i32
    %c0_i32_0 = arith.constant 0 : i32
    return %arg0, %c0_i32 : i32, i32
  }
}

module attributes {stable_mosaic.version = 11 : i64} {
  func.func @_matmul_bias_kernel(%arg0: i32, %arg1: i32, %arg2: memref<16x128xbf16, #tpu.memory_space<vmem>>, %arg3: memref<128x128xbf16, #tpu.memory_space<vmem>>, %arg4: memref<1x128xf32, #tpu.memory_space<vmem>>, %arg5: memref<16x128xbf16, #tpu.memory_space<vmem>>) attributes {dimension_semantics = [#tpu.dimension_semantics<parallel>, #tpu.dimension_semantics<parallel>], iteration_bounds = array<i64: 1, 1>, scalar_prefetch = 0 : i64, scratch_operands = 0 : i64, tpu.core_type = #tpu.core_type<tc>, window_params = [{transform_indices = @transform_0, window_bounds = array<i64: 16, 128>}, {transform_indices = @transform_1, window_bounds = array<i64: 128, 128>}, {transform_indices = @transform_2, window_bounds = array<i64: 1, 128>}, {transform_indices = @transform_3, window_bounds = array<i64: 16, 128>}]} {
    %c0 = arith.constant 0 : index
    %c0_0 = arith.constant 0 : index
    %0 = vector.load %arg2[%c0, %c0_0] : memref<16x128xbf16, #tpu.memory_space<vmem>>, vector<16x128xbf16>
    %c0_1 = arith.constant 0 : index
    %c0_2 = arith.constant 0 : index
    %1 = vector.load %arg3[%c0_1, %c0_2] : memref<128x128xbf16, #tpu.memory_space<vmem>>, vector<128x128xbf16>
    %cst = arith.constant dense<0.000000e+00> : vector<16x128xf32>
    %2 = tpu.matmul %0, %1, %cst {dimension_numbers = #tpu.dot_dimension_numbers<[1], [0], [0], [1], [0, 0, 1, 1], [], []>} : vector<16x128xbf16>, vector<128x128xbf16>, vector<16x128xf32> -> vector<16x128xf32>
    %c0_3 = arith.constant 0 : index
    %c0_4 = arith.constant 0 : index
    %3 = vector.load %arg4[%c0_3, %c0_4] : memref<1x128xf32, #tpu.memory_space<vmem>>, vector<1x128xf32>
    %4 = vector.broadcast %3 : vector<1x128xf32> to vector<16x128xf32>
    %5 = arith.addf %2, %4 : vector<16x128xf32>
    %6 = arith.truncf %5 : vector<16x128xf32> to vector<16x128xbf16>
    %c0_5 = arith.constant 0 : index
    %c0_6 = arith.constant 0 : index
    %7 = vector.load %arg5[%c0_5, %c0_6] : memref<16x128xbf16, #tpu.memory_space<vmem>>, vector<16x128xbf16>
    tpu.vector_store %arg5[%c0_5, %c0_6], %6 {strides = array<i32>} : memref<16x128xbf16, #tpu.memory_space<vmem>>, vector<16x128xbf16>,
    return
  }
  func.func @transform_0(%arg0: i32, %arg1: i32) -> (i32, i32) {
    %c0_i32 = arith.constant 0 : i32
    %c0_i32_0 = arith.constant 0 : i32
    return %arg0, %c0_i32 : i32, i32
  }
  func.func @transform_1(%arg0: i32, %arg1: i32) -> (i32, i32) {
    %c0_i32 = arith.constant 0 : i32
    %c0_i32_0 = arith.constant 0 : i32
    return %c0_i32, %arg1 : i32, i32
  }
  func.func @transform_2(%arg0: i32, %arg1: i32) -> (i32, i32) {
    %c0_i32 = arith.constant 0 : i32
    %c0_i32_0 = arith.constant 0 : i32
    return %c0_i32, %arg1 : i32, i32
  }
  func.func @transform_3(%arg0: i32, %arg1: i32) -> (i32, i32) {
    %c0_i32 = arith.constant 0 : i32
    return %arg0, %arg1 : i32, i32
  }
}

module attributes {stable_mosaic.version = 11 : i64} {
  func.func @_matmul_bias_kernel(%arg0: i32, %arg1: i32, %arg2: memref<32x128xbf16, #tpu.memory_space<vmem>>, %arg3: memref<128x256xbf16, #tpu.memory_space<vmem>>, %arg4: memref<1x256xf32, #tpu.memory_space<vmem>>, %arg5: memref<32x256xbf16, #tpu.memory_space<vmem>>) attributes {dimension_semantics = [#tpu.dimension_semantics<parallel>, #tpu.dimension_semantics<parallel>], iteration_bounds = array<i64: 1, 1>, scalar_prefetch = 0 : i64, scratch_operands = 0 : i64, tpu.core_type = #tpu.core_type<tc>, window_params = [{transform_indices = @transform_0, window_bounds = array<i64: 32, 128>}, {transform_indices = @transform_1, window_bounds = array<i64: 128, 256>}, {transform_indices = @transform_2, window_bounds = array<i64: 1, 256>}, {transform_indices = @transform_3, window_bounds = array<i64: 32, 256>}]} {
    %c0 = arith.constant 0 : index
    %c0_0 = arith.constant 0 : index
    %0 = vector.load %arg2[%c0, %c0_0] : memref<32x128xbf16, #tpu.memory_space<vmem>>, vector<32x128xbf16>
    %c0_1 = arith.constant 0 : index
    %c0_2 = arith.constant 0 : index
    %1 = vector.load %arg3[%c0_1, %c0_2] : memref<128x256xbf16, #tpu.memory_space<vmem>>, vector<128x256xbf16>
    %cst = arith.constant dense<0.000000e+00> : vector<32x256xf32>
    %2 = tpu.matmul %0, %1, %cst {dimension_numbers = #tpu.dot_dimension_numbers<[1], [0], [0], [1], [0, 0, 1, 1], [], []>} : vector<32x128xbf16>, vector<128x256xbf16>, vector<32x256xf32> -> vector<32x256xf32>
    %c0_3 = arith.constant 0 : index
    %c0_4 = arith.constant 0 : index
    %3 = vector.load %arg4[%c0_3, %c0_4] : memref<1x256xf32, #tpu.memory_space<vmem>>, vector<1x256xf32>
    %4 = vector.broadcast %3 : vector<1x256xf32> to vector<32x256xf32>
    %5 = arith.addf %2, %4 : vector<32x256xf32>
    %6 = arith.truncf %5 : vector<32x256xf32> to vector<32x256xbf16>
    %c0_5 = arith.constant 0 : index
    %c0_6 = arith.constant 0 : index
    %7 = vector.load %arg5[%c0_5, %c0_6] : memref<32x256xbf16, #tpu.memory_space<vmem>>, vector<32x256xbf16>
    tpu.vector_store %arg5[%c0_5, %c0_6], %6 {strides = array<i32>} : memref<32x256xbf16, #tpu.memory_space<vmem>>, vector<32x256xbf16>,
    return
  }
  func.func @transform_0(%arg0: i32, %arg1: i32) -> (i32, i32) {
    %c0_i32 = arith.constant 0 : i32
    %c0_i32_0 = arith.constant 0 : i32
    return %arg0, %c0_i32 : i32, i32
  }
  func.func @transform_1(%arg0: i32, %arg1: i32) -> (i32, i32) {
    %c0_i32 = arith.constant 0 : i32
    %c0_i32_0 = arith.constant 0 : i32
    return %c0_i32, %arg1 : i32, i32
  }
  func.func @transform_2(%arg0: i32, %arg1: i32) -> (i32, i32) {
    %c0_i32 = arith.constant 0 : i32
    %c0_i32_0 = arith.constant 0 : i32
    return %c0_i32, %arg1 : i32, i32
  }
  func.func @transform_3(%arg0: i32, %arg1: i32) -> (i32, i32) {
    %c0_i32 = arith.constant 0 : i32
    return %arg0, %arg1 : i32, i32
  }
}

module attributes {stable_mosaic.version = 11 : i64} {
  func.func @_matmul_bias_kernel(%arg0: i32, %arg1: i32, %arg2: memref<16x128xbf16, #tpu.memory_space<vmem>>, %arg3: memref<128x256xbf16, #tpu.memory_space<vmem>>, %arg4: memref<1x256xf32, #tpu.memory_space<vmem>>, %arg5: memref<16x256xbf16, #tpu.memory_space<vmem>>) attributes {dimension_semantics = [#tpu.dimension_semantics<parallel>, #tpu.dimension_semantics<parallel>], iteration_bounds = array<i64: 1, 2>, scalar_prefetch = 0 : i64, scratch_operands = 0 : i64, tpu.core_type = #tpu.core_type<tc>, window_params = [{transform_indices = @transform_0, window_bounds = array<i64: 16, 128>}, {transform_indices = @transform_1, window_bounds = array<i64: 128, 256>}, {transform_indices = @transform_2, window_bounds = array<i64: 1, 256>}, {transform_indices = @transform_3, window_bounds = array<i64: 16, 256>}]} {
    %c0 = arith.constant 0 : index
    %c0_0 = arith.constant 0 : index
    %0 = vector.load %arg2[%c0, %c0_0] : memref<16x128xbf16, #tpu.memory_space<vmem>>, vector<16x128xbf16>
    %c0_1 = arith.constant 0 : index
    %c0_2 = arith.constant 0 : index
    %1 = vector.load %arg3[%c0_1, %c0_2] : memref<128x256xbf16, #tpu.memory_space<vmem>>, vector<128x256xbf16>
    %cst = arith.constant dense<0.000000e+00> : vector<16x256xf32>
    %2 = tpu.matmul %0, %1, %cst {dimension_numbers = #tpu.dot_dimension_numbers<[1], [0], [0], [1], [0, 0, 1, 1], [], []>} : vector<16x128xbf16>, vector<128x256xbf16>, vector<16x256xf32> -> vector<16x256xf32>
    %c0_3 = arith.constant 0 : index
    %c0_4 = arith.constant 0 : index
    %3 = vector.load %arg4[%c0_3, %c0_4] : memref<1x256xf32, #tpu.memory_space<vmem>>, vector<1x256xf32>
    %4 = vector.broadcast %3 : vector<1x256xf32> to vector<16x256xf32>
    %5 = arith.addf %2, %4 : vector<16x256xf32>
    %cst_5 = arith.constant 0.000000e+00 : f32
    %6 = vector.broadcast %cst_5 : f32 to vector<16x256xf32>
    %7 = arith.maximumf %5, %6 : vector<16x256xf32>
    %8 = arith.truncf %7 : vector<16x256xf32> to vector<16x256xbf16>
    %c0_6 = arith.constant 0 : index
    %c0_7 = arith.constant 0 : index
    %9 = vector.load %arg5[%c0_6, %c0_7] : memref<16x256xbf16, #tpu.memory_space<vmem>>, vector<16x256xbf16>
    tpu.vector_store %arg5[%c0_6, %c0_7], %8 {strides = array<i32>} : memref<16x256xbf16, #tpu.memory_space<vmem>>, vector<16x256xbf16>,
    return
  }
  func.func @transform_0(%arg0: i32, %arg1: i32) -> (i32, i32) {
    %c0_i32 = arith.constant 0 : i32
    %c0_i32_0 = arith.constant 0 : i32
    return %arg0, %c0_i32 : i32, i32
  }
  func.func @transform_1(%arg0: i32, %arg1: i32) -> (i32, i32) {
    %c0_i32 = arith.constant 0 : i32
    %c0_i32_0 = arith.constant 0 : i32
    return %c0_i32, %arg1 : i32, i32
  }
  func.func @transform_2(%arg0: i32, %arg1: i32) -> (i32, i32) {
    %c0_i32 = arith.constant 0 : i32
    %c0_i32_0 = arith.constant 0 : i32
    return %c0_i32, %arg1 : i32, i32
  }
  func.func @transform_3(%arg0: i32, %arg1: i32) -> (i32, i32) {
    %c0_i32 = arith.constant 0 : i32
    return %arg0, %arg1 : i32, i32
  }
}

module attributes {stable_mosaic.version = 11 : i64} {
  func.func @_matmul_add_ln_single_kernel(%arg0: i32, %arg1: memref<16x512xbf16, #tpu.memory_space<vmem>>, %arg2: memref<512x128xbf16, #tpu.memory_space<vmem>>, %arg3: memref<1x128xf32, #tpu.memory_space<vmem>>, %arg4: memref<16x128xf32, #tpu.memory_space<vmem>>, %arg5: memref<1x128xf32, #tpu.memory_space<vmem>>, %arg6: memref<1x128xf32, #tpu.memory_space<vmem>>, %arg7: memref<16x128xf32, #tpu.memory_space<vmem>>) attributes {dimension_semantics = [#tpu.dimension_semantics<parallel>], iteration_bounds = array<i64: 1>, scalar_prefetch = 0 : i64, scratch_operands = 0 : i64, tpu.core_type = #tpu.core_type<tc>, window_params = [{transform_indices = @transform_0, window_bounds = array<i64: 16, 512>}, {pipeline_mode = #tpu.pipeline_mode<synchronous>, transform_indices = @transform_1, window_bounds = array<i64: 512, 128>}, {pipeline_mode = #tpu.pipeline_mode<synchronous>, transform_indices = @transform_2, window_bounds = array<i64: 1, 128>}, {transform_indices = @transform_3, window_bounds = array<i64: 16, 128>}, {pipeline_mode = #tpu.pipeline_mode<synchronous>, transform_indices = @transform_4, window_bounds = array<i64: 1, 128>}, {pipeline_mode = #tpu.pipeline_mode<synchronous>, transform_indices = @transform_5, window_bounds = array<i64: 1, 128>}, {transform_indices = @transform_6, window_bounds = array<i64: 16, 128>}]} {
    %c0 = arith.constant 0 : index
    %c0_0 = arith.constant 0 : index
    %0 = vector.load %arg1[%c0, %c0_0] : memref<16x512xbf16, #tpu.memory_space<vmem>>, vector<16x512xbf16>
    %c0_1 = arith.constant 0 : index
    %c0_2 = arith.constant 0 : index
    %1 = vector.load %arg2[%c0_1, %c0_2] : memref<512x128xbf16, #tpu.memory_space<vmem>>, vector<512x128xbf16>
    %cst = arith.constant dense<0.000000e+00> : vector<16x128xf32>
    %2 = tpu.matmul %0, %1, %cst {dimension_numbers = #tpu.dot_dimension_numbers<[1], [0], [0], [1], [0, 0, 1, 1], [], []>} : vector<16x512xbf16>, vector<512x128xbf16>, vector<16x128xf32> -> vector<16x128xf32>
    %c0_3 = arith.constant 0 : index
    %c0_4 = arith.constant 0 : index
    %3 = vector.load %arg3[%c0_3, %c0_4] : memref<1x128xf32, #tpu.memory_space<vmem>>, vector<1x128xf32>
    %4 = vector.broadcast %3 : vector<1x128xf32> to vector<16x128xf32>
    %5 = arith.addf %2, %4 : vector<16x128xf32>
    %c0_5 = arith.constant 0 : index
    %c0_6 = arith.constant 0 : index
    %6 = vector.load %arg4[%c0_5, %c0_6] : memref<16x128xf32, #tpu.memory_space<vmem>>, vector<16x128xf32>
    %7 = arith.addf %5, %6 : vector<16x128xf32>
    %cst_7 = arith.constant dense<0.000000e+00> : vector<16xf32>
    %8 = vector.multi_reduction <add>, %7, %cst_7 [1] : vector<16x128xf32> to vector<16xf32>
    %9 = vector.shape_cast %8 : vector<16xf32> to vector<16x1xf32>
    %cst_8 = arith.constant 1.280000e+02 : f32
    %10 = vector.broadcast %cst_8 : f32 to vector<16x1xf32>
    %11 = arith.divf %9, %10 : vector<16x1xf32>
    %12 = vector.broadcast %11 : vector<16x1xf32> to vector<16x128xf32>
    %13 = arith.subf %7, %12 : vector<16x128xf32>
    %14 = arith.mulf %13, %13 : vector<16x128xf32>
    %cst_9 = arith.constant dense<0.000000e+00> : vector<16xf32>
    %15 = vector.multi_reduction <add>, %14, %cst_9 [1] : vector<16x128xf32> to vector<16xf32>
    %16 = vector.shape_cast %15 : vector<16xf32> to vector<16x1xf32>
    %cst_10 = arith.constant 1.280000e+02 : f32
    %17 = vector.broadcast %cst_10 : f32 to vector<16x1xf32>
    %18 = arith.divf %16, %17 : vector<16x1xf32>
    %cst_11 = arith.constant 9.99999974E-6 : f32
    %19 = vector.broadcast %cst_11 : f32 to vector<16x1xf32>
    %20 = arith.addf %18, %19 : vector<16x1xf32>
    %21 = math.rsqrt %20 : vector<16x1xf32>
    %22 = vector.broadcast %21 : vector<16x1xf32> to vector<16x128xf32>
    %23 = arith.mulf %13, %22 : vector<16x128xf32>
    %c0_12 = arith.constant 0 : index
    %c0_13 = arith.constant 0 : index
    %24 = vector.load %arg5[%c0_12, %c0_13] : memref<1x128xf32, #tpu.memory_space<vmem>>, vector<1x128xf32>
    %25 = vector.broadcast %24 : vector<1x128xf32> to vector<16x128xf32>
    %26 = arith.mulf %23, %25 : vector<16x128xf32>
    %c0_14 = arith.constant 0 : index
    %c0_15 = arith.constant 0 : index
    %27 = vector.load %arg6[%c0_14, %c0_15] : memref<1x128xf32, #tpu.memory_space<vmem>>, vector<1x128xf32>
    %28 = vector.broadcast %27 : vector<1x128xf32> to vector<16x128xf32>
    %29 = arith.addf %26, %28 : vector<16x128xf32>
    %c0_16 = arith.constant 0 : index
    %c0_17 = arith.constant 0 : index
    %30 = vector.load %arg7[%c0_16, %c0_17] : memref<16x128xf32, #tpu.memory_space<vmem>>, vector<16x128xf32>
    tpu.vector_store %arg7[%c0_16, %c0_17], %29 {strides = array<i32>} : memref<16x128xf32, #tpu.memory_space<vmem>>, vector<16x128xf32>,
    return
  }
  func.func @transform_0(%arg0: i32) -> (i32, i32) {
    %c0_i32 = arith.constant 0 : i32
    %c0_i32_0 = arith.constant 0 : i32
    return %arg0, %c0_i32 : i32, i32
  }
  func.func @transform_1(%arg0: i32) -> (i32, i32) {
    %c0_i32 = arith.constant 0 : i32
    %c0_i32_0 = arith.constant 0 : i32
    %c0_i32_1 = arith.constant 0 : i32
    return %c0_i32, %c0_i32_0 : i32, i32
  }
  func.func @transform_2(%arg0: i32) -> (i32, i32) {
    %c0_i32 = arith.constant 0 : i32
    %c0_i32_0 = arith.constant 0 : i32
    %c0_i32_1 = arith.constant 0 : i32
    return %c0_i32, %c0_i32_0 : i32, i32
  }
  func.func @transform_3(%arg0: i32) -> (i32, i32) {
    %c0_i32 = arith.constant 0 : i32
    %c0_i32_0 = arith.constant 0 : i32
    return %arg0, %c0_i32 : i32, i32
  }
  func.func @transform_4(%arg0: i32) -> (i32, i32) {
    %c0_i32 = arith.constant 0 : i32
    %c0_i32_0 = arith.constant 0 : i32
    %c0_i32_1 = arith.constant 0 : i32
    return %c0_i32, %c0_i32_0 : i32, i32
  }
  func.func @transform_5(%arg0: i32) -> (i32, i32) {
    %c0_i32 = arith.constant 0 : i32
    %c0_i32_0 = arith.constant 0 : i32
    %c0_i32_1 = arith.constant 0 : i32
    return %c0_i32, %c0_i32_0 : i32, i32
  }
  func.func @transform_6(%arg0: i32) -> (i32, i32) {
    %c0_i32 = arith.constant 0 : i32
    %c0_i32_0 = arith.constant 0 : i32
    return %arg0, %c0_i32 : i32, i32
  }
}

module attributes {stable_mosaic.version = 11 : i64} {
  func.func @_attn_kernel(%arg0: i32, %arg1: memref<8x8x16xbf16, #tpu.memory_space<vmem>>, %arg2: memref<8x16x16xbf16, #tpu.memory_space<vmem>>, %arg3: memref<8x16x16xbf16, #tpu.memory_space<vmem>>, %arg4: memref<8x8x16xbf16, #tpu.memory_space<vmem>>) attributes {dimension_semantics = [#tpu.dimension_semantics<parallel>], iteration_bounds = array<i64: 2>, scalar_prefetch = 0 : i64, scratch_operands = 0 : i64, tpu.core_type = #tpu.core_type<tc>, window_params = [{transform_indices = @transform_0, window_bounds = array<i64: 8, 8, 16>}, {transform_indices = @transform_1, window_bounds = array<i64: 8, 16, 16>}, {transform_indices = @transform_2, window_bounds = array<i64: 8, 16, 16>}, {transform_indices = @transform_3, window_bounds = array<i64: 8, 8, 16>}]} {
    %c0 = arith.constant 0 : index
    %c0_0 = arith.constant 0 : index
    %c0_1 = arith.constant 0 : index
    %0 = vector.load %arg1[%c0, %c0_0, %c0_1] : memref<8x8x16xbf16, #tpu.memory_space<vmem>>, vector<8x8x16xbf16>
    %c0_2 = arith.constant 0 : index
    %c0_3 = arith.constant 0 : index
    %c0_4 = arith.constant 0 : index
    %1 = vector.load %arg2[%c0_2, %c0_3, %c0_4] : memref<8x16x16xbf16, #tpu.memory_space<vmem>>, vector<8x16x16xbf16>
    %c0_5 = arith.constant 0 : index
    %c0_6 = arith.constant 0 : index
    %c0_7 = arith.constant 0 : index
    %2 = vector.load %arg3[%c0_5, %c0_6, %c0_7] : memref<8x16x16xbf16, #tpu.memory_space<vmem>>, vector<8x16x16xbf16>
    "tpu.trace_start"() <{level = 10 : i32, message = "hqd,hkd->hqk"}> : () -> ()
    %cst = arith.constant dense<0.000000e+00> : vector<8x8x16xf32>
    %3 = tpu.matmul %0, %1, %cst {dimension_numbers = #tpu.dot_dimension_numbers<[2], [2], [1], [1], [0, 0, 0, 1, 1, 1], [0], [0]>} : vector<8x8x16xbf16>, vector<8x16x16xbf16>, vector<8x8x16xf32> -> vector<8x8x16xf32>
    "tpu.trace_stop"() : () -> ()
    %cst_8 = arith.constant 2.500000e-01 : f32
    %4 = vector.broadcast %cst_8 : f32 to vector<8x8x16xf32>
    %5 = arith.mulf %3, %4 : vector<8x8x16xf32>
    %cst_9 = arith.constant dense<0xFF800000> : vector<8x8xf32>
    %6 = vector.multi_reduction <maximumf>, %5, %cst_9 [2] : vector<8x8x16xf32> to vector<8x8xf32>
    %7 = vector.shape_cast %6 : vector<8x8xf32> to vector<8x8x1xf32>
    %8 = vector.broadcast %7 : vector<8x8x1xf32> to vector<8x8x16xf32>
    %9 = arith.subf %5, %8 : vector<8x8x16xf32>
    %10 = math.exp %9 : vector<8x8x16xf32>
    %cst_10 = arith.constant dense<0.000000e+00> : vector<8x8xf32>
    %11 = vector.multi_reduction <add>, %10, %cst_10 [2] : vector<8x8x16xf32> to vector<8x8xf32>
    %12 = vector.shape_cast %11 : vector<8x8xf32> to vector<8x8x1xf32>
    %13 = tpu.reciprocal %12 {approx = true} : vector<8x8x1xf32> -> vector<8x8x1xf32>
    %14 = vector.broadcast %13 : vector<8x8x1xf32> to vector<8x8x16xf32>
    %15 = arith.mulf %10, %14 : vector<8x8x16xf32>
    %16 = arith.truncf %15 : vector<8x8x16xf32> to vector<8x8x16xbf16>
    "tpu.trace_start"() <{level = 10 : i32, message = "hqk,hkd->hqd"}> : () -> ()
    %cst_11 = arith.constant dense<0.000000e+00> : vector<8x8x16xf32>
    %17 = tpu.matmul %16, %2, %cst_11 {dimension_numbers = #tpu.dot_dimension_numbers<[2], [1], [1], [2], [0, 0, 0, 1, 1, 2], [0], [0]>} : vector<8x8x16xbf16>, vector<8x16x16xbf16>, vector<8x8x16xf32> -> vector<8x8x16xf32>
    "tpu.trace_stop"() : () -> ()
    %18 = arith.truncf %17 : vector<8x8x16xf32> to vector<8x8x16xbf16>
    %c0_12 = arith.constant 0 : index
    %c0_13 = arith.constant 0 : index
    %c0_14 = arith.constant 0 : index
    %19 = vector.load %arg4[%c0_12, %c0_13, %c0_14] : memref<8x8x16xbf16, #tpu.memory_space<vmem>>, vector<8x8x16xbf16>
    tpu.vector_store %arg4[%c0_12, %c0_13, %c0_14], %18 {strides = array<i32>} : memref<8x8x16xbf16, #tpu.memory_space<vmem>>, vector<8x8x16xbf16>,
    return
  }
  func.func @transform_0(%arg0: i32) -> (i32, i32, i32) {
    %c0_i32 = arith.constant 0 : i32
    %c0_i32_0 = arith.constant 0 : i32
    %c0_i32_1 = arith.constant 0 : i32
    return %arg0, %c0_i32, %c0_i32_0 : i32, i32, i32
  }
  func.func @transform_1(%arg0: i32) -> (i32, i32, i32) {
    %c0_i32 = arith.constant 0 : i32
    %c0_i32_0 = arith.constant 0 : i32
    %c0_i32_1 = arith.constant 0 : i32
    return %arg0, %c0_i32, %c0_i32_0 : i32, i32, i32
  }
  func.func @transform_2(%arg0: i32) -> (i32, i32, i32) {
    %c0_i32 = arith.constant 0 : i32
    %c0_i32_0 = arith.constant 0 : i32
    %c0_i32_1 = arith.constant 0 : i32
    return %arg0, %c0_i32, %c0_i32_0 : i32, i32, i32
  }
  func.func @transform_3(%arg0: i32) -> (i32, i32, i32) {
    %c0_i32 = arith.constant 0 : i32
    %c0_i32_0 = arith.constant 0 : i32
    %c0_i32_1 = arith.constant 0 : i32
    return %arg0, %c0_i32, %c0_i32_0 : i32, i32, i32
  }
}

module attributes {stable_mosaic.version = 11 : i64} {
  func.func @_matmul_bias_kernel(%arg0: i32, %arg1: i32, %arg2: memref<16x128xbf16, #tpu.memory_space<vmem>>, %arg3: memref<128x128xbf16, #tpu.memory_space<vmem>>, %arg4: memref<1x128xf32, #tpu.memory_space<vmem>>, %arg5: memref<16x128xf32, #tpu.memory_space<vmem>>) attributes {dimension_semantics = [#tpu.dimension_semantics<parallel>, #tpu.dimension_semantics<parallel>], iteration_bounds = array<i64: 1, 1>, scalar_prefetch = 0 : i64, scratch_operands = 0 : i64, tpu.core_type = #tpu.core_type<tc>, window_params = [{transform_indices = @transform_0, window_bounds = array<i64: 16, 128>}, {transform_indices = @transform_1, window_bounds = array<i64: 128, 128>}, {transform_indices = @transform_2, window_bounds = array<i64: 1, 128>}, {transform_indices = @transform_3, window_bounds = array<i64: 16, 128>}]} {
    %c0 = arith.constant 0 : index
    %c0_0 = arith.constant 0 : index
    %0 = vector.load %arg2[%c0, %c0_0] : memref<16x128xbf16, #tpu.memory_space<vmem>>, vector<16x128xbf16>
    %c0_1 = arith.constant 0 : index
    %c0_2 = arith.constant 0 : index
    %1 = vector.load %arg3[%c0_1, %c0_2] : memref<128x128xbf16, #tpu.memory_space<vmem>>, vector<128x128xbf16>
    %cst = arith.constant dense<0.000000e+00> : vector<16x128xf32>
    %2 = tpu.matmul %0, %1, %cst {dimension_numbers = #tpu.dot_dimension_numbers<[1], [0], [0], [1], [0, 0, 1, 1], [], []>} : vector<16x128xbf16>, vector<128x128xbf16>, vector<16x128xf32> -> vector<16x128xf32>
    %c0_3 = arith.constant 0 : index
    %c0_4 = arith.constant 0 : index
    %3 = vector.load %arg4[%c0_3, %c0_4] : memref<1x128xf32, #tpu.memory_space<vmem>>, vector<1x128xf32>
    %4 = vector.broadcast %3 : vector<1x128xf32> to vector<16x128xf32>
    %5 = arith.addf %2, %4 : vector<16x128xf32>
    %c0_5 = arith.constant 0 : index
    %c0_6 = arith.constant 0 : index
    %6 = vector.load %arg5[%c0_5, %c0_6] : memref<16x128xf32, #tpu.memory_space<vmem>>, vector<16x128xf32>
    tpu.vector_store %arg5[%c0_5, %c0_6], %5 {strides = array<i32>} : memref<16x128xf32, #tpu.memory_space<vmem>>, vector<16x128xf32>,
    return
  }
  func.func @transform_0(%arg0: i32, %arg1: i32) -> (i32, i32) {
    %c0_i32 = arith.constant 0 : i32
    %c0_i32_0 = arith.constant 0 : i32
    return %arg0, %c0_i32 : i32, i32
  }
  func.func @transform_1(%arg0: i32, %arg1: i32) -> (i32, i32) {
    %c0_i32 = arith.constant 0 : i32
    %c0_i32_0 = arith.constant 0 : i32
    return %c0_i32, %arg1 : i32, i32
  }
  func.func @transform_2(%arg0: i32, %arg1: i32) -> (i32, i32) {
    %c0_i32 = arith.constant 0 : i32
    %c0_i32_0 = arith.constant 0 : i32
    return %c0_i32, %arg1 : i32, i32
  }
  func.func @transform_3(%arg0: i32, %arg1: i32) -> (i32, i32) {
    %c0_i32 = arith.constant 0 : i32
    return %arg0, %arg1 : i32, i32
  }
}

</mosaic_0001>

<bundles_post_ra>
// kernel: decoder_forward.22
= control target key start
LH: loop header
LB: loop body
LE: loop exit
PB: predicated region body
PF: predicated region fallthrough
CT: control target
= control target key end

     0   :  { %v208_v0 = vmov 0.0   ;;  %vm209_vm0 = vmmov 0   ;;  %s263_s1 = inlined_call_operand.vmem [shape: bf16[128,128], index: 1, kind: input, shape index: {}]   ;;  %s264_s0 = inlined_call_operand.vmem [shape: bf16[16,128], index: 0, kind: input, shape index: {}]   ;;  %s265_s2 = inlined_call_operand.vmem [shape: f32[1,128], index: 2, kind: input, shape index: {}]   ;;  %s266_s3 = inlined_call_operand.vmem [shape: bf16[16,128], index: 3, kind: output, shape index: {}]  }
   0x1   :  { %177 = vmatprep.subr.bf16.mxu0 %v208_v0  ;;  %v199_v1 = vld [vmem:[%s263_s1 + $0x38] sm:$0xff]   ;;  %193 = vmatprep.mubr.msk.bf16.mxu0 %vm209_vm0, %v208_v0  ;;  %v200_v2 = vld [vmem:[%s263_s1 + $0x30] sm:$0xff]   ;;  %v201_v3 = vld [vmem:[%s263_s1 + $0x28] sm:$0xff]  }
   0x2   :  { %178 = vmatpush3.bf16.msra.mxu0 %v199_v1  ;;  %v202_v4 = vld [vmem:[%s263_s1 + $0x20] sm:$0xff]   ;;  %v203_v5 = vld [vmem:[%s263_s1 + $0x18] sm:$0xff]   ;;  %v204_v6 = vld [vmem:[%s263_s1 + $0x10] sm:$0xff]  }
   0x3   :  { %179 = vmatprep.subr.bf16.mxu0 %v208_v0  ;;  %v205_v7 = vld [vmem:[%s263_s1 + $0x8] sm:$0xff]   ;;  %v206_v8 = vld [vmem:[%s263_s1] sm:$0xff]  }
   0x4   :  { %v207_v9 = vld [vmem:[%s264_s0] sm:$0xff]  }
   0x5   :  { %v149_v11 = vld [vmem:[%s265_s2] ss:$0 sm:$0xff] }
   0x6   :  { %180 = vmatpush3.bf16.msra.mxu0 %v200_v2 }
   0x7   :  { %181 = vmatprep.subr.bf16.mxu0 %v208_v0 }
   0xa   :  { %182 = vmatpush3.bf16.msra.mxu0 %v201_v3 }
   0xb   :  { %183 = vmatprep.subr.bf16.mxu0 %v208_v0 }
   0xe   :  { %184 = vmatpush3.bf16.msra.mxu0 %v202_v4 }
   0xf   :  { %185 = vmatprep.subr.bf16.mxu0 %v208_v0 }
  0x12   :  { %186 = vmatpush3.bf16.msra.mxu0 %v203_v5 }
  0x13   :  { %187 = vmatprep.subr.bf16.mxu0 %v208_v0 }
  0x16   :  { %188 = vmatpush3.bf16.msra.mxu0 %v204_v6 }
  0x17   :  { %189 = vmatprep.subr.bf16.mxu0 %v208_v0 }
  0x1a   :  { %190 = vmatpush3.bf16.msra.mxu0 %v205_v7 }
  0x1b   :  { %191 = vmatprep.subr.bf16.mxu0 %v208_v0 }
  0x1e   :  { %192 = vmatpush3.bf16.msra.mxu0 %v206_v8 }
  0x21   :  { %194 = vmatmul.mubr.bf16.vlgmr.msra.gmra.mxu0 %v207_v9 }
  0xe1   :  { %v128_v10 = vpop.f32.mrf.mxu0 }
  0xe2   :  { %v129_v14 = vadd.f32 %v149_v11, %v128_v10 }
  0xe3   :  { %v195_v12 = vpop.f32.mrf.mxu0 }
  0xe5   :  { %v131_v13 = vpop.f32.mrf.mxu0 }
  0xe6   :  { %v132_v15 = vadd.f32 %v149_v11, %v131_v13 }
  0xe7   :  { %v196_v16 = vpop.f32.mrf.mxu0 }
  0xe8   :  { %v166_v17 = vpack.c.bf16 %v132_v15, %v129_v14 }
  0xea   :  { %167 = vst [vmem:[%s266_s3] sm:$0xff] %v166_v17  }

// kernel: decoder_forward.19
= control target key start
LH: loop header
LB: loop body
LE: loop exit
PB: predicated region body
PF: predicated region fallthrough
CT: control target
= control target key end

     0   :  { %s773_s12 = smov 0   ;;  %s775_s13 = smov 0   ;;  %s875_s0 = inlined_call_operand.vmem [shape: bf16[16,128], index: 0, kind: input, shape index: {}]   ;;  %s876_s1 = inlined_call_operand.vmem [shape: bf16[128,384], index: 1, kind: input, shape index: {}]   ;;  %s877_s2 = inlined_call_operand.vmem [shape: f32[1,384], index: 2, kind: input, shape index: {}]   ;;  %s878_s3 = inlined_call_operand.vmem [shape: bf16[16,384], index: 3, kind: output, shape index: {}]  }
   0x1   :  { %s777_s14 = smov 0   ;;  %s779_s15 = smov 0  }
   0x2   :  { %s781_s16 = smov 0  }
   0x3 LB: > { %s22_s17 = sadd.s32 1, %s745_s15  ;;  %s598_s18 = sadd.s32 4294967295, %s749_s16   ;;  %s749_s16 = sphi %s781_s16, %s13_s16   ;;  %s745_s15 = sphi %s779_s15, %s883_s15   ;;  %s741_s14 = sphi %s777_s14, %s882_s14   ;;  %s737_s13 = sphi %s775_s13, %s881_s13   ;;  %s733_s12 = sphi %s773_s12, %s880_s12  }
   0x4   : > { %p23_p0 = scmp.ge.s32.totalorder %s22_s17, 3  ;;  %p65_p1 = scmp.ne.s32.totalorder %s737_s13, %s733_s12 }
   0x5   : > { %p66_p2 = scmp.eq.s32.totalorder %s749_s16, 0  ;;  %p123_p4 = scmp.eq.s32.totalorder %s598_s18, 2 }
   0x6   : > { %s885_s17 = smov (%p23_p0, %s22_s17), 0  ;;  %s58_s20 = sadd.s32 1, %s737_s13 }
   0x7   : > { %p67_p3 = por %p66_p2, %p65_p1  ;;  %s55_s19 = ssub.s32 %s745_s15, %s885_s17 }
   0x8   : > { %p56_p5 = scmp.eq.s32.totalorder %s55_s19, 0  ;;  %p808_p6 = por %p123_p4, %p65_p1 }
   0x9   : > { %p602_p7 = scmp.ge.s32.totalorder %s749_s16, 3 }
   0xa   : > { %s813_s22 = scalar_select %p56_p5, %s737_s13, %s58_s20  }
   0xb   : > { %154 = sbr.rel (%p602_p7) target bundleno = 30 (0x1e), region = 20 }
  0x10   : > { %157 = sbr.rel (!%p67_p3) target bundleno = 30 (0x1e), region = 24  ;;  %s159_s23 = sand.u32 (%p67_p3), 1, %s737_s13  }
  0x11   : > { %s604_s24 = sshll.u32 (%p67_p3), %s745_s15, 2  ;;  %s603_s25 = sshll.u32 (%p67_p3), %s159_s23, 6 }
  0x12   : > { %s821_s28 = scalar_lea.vmem (%p67_p3), %s876_s1, %s604_s24  ;;  %s161_s29 = scalar_lea.vmem (%p67_p3), [#allocation2], %s603_s25 }
  0x13   : > { %v180_v0 = vld [vmem:[%s821_s28] sm:$0xf] (%p67_p3)  ;;  %v182_v1 = vld [vmem:[%s821_s28 + $0xc] sm:$0xf] (%p67_p3)  ;;  %v184_v2 = vld [vmem:[%s821_s28 + $0x18] sm:$0xf] (%p67_p3) }
  0x14   : > { %181 = vst [vmem:[%s161_s29] sm:$0xf] (%p67_p3), %v180_v0  ;;  %183 = vst [vmem:[%s161_s29 + $0x4] sm:$0xf] (%p67_p3), %v182_v1  ;;  %v186_v3 = vld [vmem:[%s821_s28 + $0x24] sm:$0xf] (%p67_p3) }
  0x15   : > { %v188_v4 = vld [vmem:[%s821_s28 + $0x30] sm:$0xf]  ;;  %185 = vst [vmem:[%s161_s29 + $0x8] sm:$0xf] %v184_v2  ;;  %187 = vst [vmem:[%s161_s29 + $0xc] sm:$0xf] %v186_v3 }
  0x16   : > { %189 = vst [vmem:[%s161_s29 + $0x10] sm:$0xf] %v188_v4  ;;  %v190_v5 = vld [vmem:[%s821_s28 + $0x3c] sm:$0xf]  ;;  %v192_v6 = vld [vmem:[%s821_s28 + $0x48] sm:$0xf] }
  0x17   : > { %v194_v7 = vld [vmem:[%s821_s28 + $0x54] sm:$0xf]  ;;  %191 = vst [vmem:[%s161_s29 + $0x14] sm:$0xf] %v190_v5  ;;  %193 = vst [vmem:[%s161_s29 + $0x18] sm:$0xf] %v192_v6 }
  0x18   : > { %195 = vst [vmem:[%s161_s29 + $0x1c] sm:$0xf] %v194_v7  ;;  %v196_v8 = vld [vmem:[%s821_s28 + $0x60] sm:$0xf]  ;;  %v198_v9 = vld [vmem:[%s821_s28 + $0x6c] sm:$0xf] }
  0x19   : > { %v200_v10 = vld [vmem:[%s821_s28 + $0x78] sm:$0xf]  ;;  %197 = vst [vmem:[%s161_s29 + $0x20] sm:$0xf] %v196_v8  ;;  %199 = vst [vmem:[%s161_s29 + $0x24] sm:$0xf] %v198_v9 }
  0x1a   : > { %201 = vst [vmem:[%s161_s29 + $0x28] sm:$0xf] %v200_v10  ;;  %v202_v11 = vld [vmem:[%s821_s28 + $0x84] sm:$0xf]  ;;  %v204_v12 = vld [vmem:[%s821_s28 + $0x90] sm:$0xf] }
  0x1b   : > { %v206_v13 = vld [vmem:[%s821_s28 + $0x9c] sm:$0xf]  ;;  %203 = vst [vmem:[%s161_s29 + $0x2c] sm:$0xf] %v202_v11  ;;  %205 = vst [vmem:[%s161_s29 + $0x30] sm:$0xf] %v204_v12 }
  0x1c   : > { %207 = vst [vmem:[%s161_s29 + $0x34] sm:$0xf] %v206_v13  ;;  %v208_v14 = vld [vmem:[%s821_s28 + $0xa8] sm:$0xf]  ;;  %v210_v15 = vld [vmem:[%s821_s28 + $0xb4] sm:$0xf] }
  0x1d   : > { %209 = vst [vmem:[%s161_s29 + $0x38] sm:$0xf] %v208_v14  ;;  %211 = vst [vmem:[%s161_s29 + $0x3c] sm:$0xf] %v210_v15 }
  0x1e PF: > { %p605_p8 = scmp.ge.s32.totalorder %s749_s16, 1  ;;  %p272_p9 = scmp.lt.s32.totalorder %s749_s16, 4 }
  0x20   : > { %p273_p10 = pnand %p605_p8, %p272_p9 }
  0x21   : > { %s279_s30 = sand.u32 (!%p273_p10), 1, %s733_s12   ;;  %p315_p11 = scmp.lt.s32.totalorder (!%p273_p10), %s741_s14, 2 }
  0x22   : > { %276 = sbr.rel (%p273_p10) target bundleno = 282 (0x11a), region = 69  ;;  %s606_s4 = sshll.u32 (!%p273_p10), %s279_s30, 6 }
  0x23   : > { %s281_s5 = scalar_lea.vmem (!%p273_p10), [#allocation2], %s606_s4  ;;  %s607_s18 = sshll.u32 (!%p273_p10), %s279_s30, 3 }
  0x24   : > { %s308_s19 = scalar_lea.vmem (!%p273_p10), [#allocation3], %s607_s18 }
  0x27   : > { %v751_v16 = vmov 0.0   ;;  %vm752_vm0 = vmmov 0   ;;  %v702_v17 = vld [vmem:[%s281_s5 + $0x38] sm:$0xff]   ;;  %v703_v18 = vld [vmem:[%s281_s5 + $0x30] sm:$0xff]   ;;  %v704_v19 = vld [vmem:[%s281_s5 + $0x28] sm:$0xff]   ;;  %s316_s8 = scalar_select %p315_p11, %s741_s14, 2 }
  0x28   : > { %640 = vmatprep.subr.bf16.mxu0 %v751_v16  ;;  %656 = vmatprep.mubr.msk.bf16.mxu0 %vm752_vm0, %v751_v16  ;;  %v705_v20 = vld [vmem:[%s281_s5 + $0x20] sm:$0xff]   ;;  %v706_v21 = vld [vmem:[%s281_s5 + $0x18] sm:$0xff]   ;;  %v707_v22 = vld [vmem:[%s281_s5 + $0x10] sm:$0xff]   ;;  %s621_s20 = sshll.u32 (%p808_p6), %s741_s14, 2 }
  0x29   : > { %641 = vmatpush3.bf16.msra.mxu0 %v702_v17  ;;  %v708_v23 = vld [vmem:[%s281_s5 + $0x8] sm:$0xff]   ;;  %v709_v24 = vld [vmem:[%s281_s5] sm:$0xff]   ;;  %s317_s11 = scalar_lea.vmem %s877_s2, %s316_s8  ;;  %s461_s25 = scalar_lea.vmem (%p808_p6), %s878_s3, %s621_s20 }
  0x2a   : > { %642 = vmatprep.subr.bf16.mxu0 %v751_v16  ;;  %v710_v25 = vld [vmem:[%s875_s0] sm:$0xff]  }
  0x2b   : > { %v608_v27 = vld [vmem:[%s317_s11] ss:$0 sm:$0xff] }
  0x2d   : > { %643 = vmatpush3.bf16.msra.mxu0 %v703_v18 }
  0x2e   : > { %644 = vmatprep.subr.bf16.mxu0 %v751_v16 }
  0x31   : > { %645 = vmatpush3.bf16.msra.mxu0 %v704_v19 }
  0x32   : > { %646 = vmatprep.subr.bf16.mxu0 %v751_v16 }
  0x35   : > { %647 = vmatpush3.bf16.msra.mxu0 %v705_v20 }
  0x36   : > { %648 = vmatprep.subr.bf16.mxu0 %v751_v16 }
  0x39   : > { %649 = vmatpush3.bf16.msra.mxu0 %v706_v21 }
  0x3a   : > { %650 = vmatprep.subr.bf16.mxu0 %v751_v16 }
  0x3d   : > { %651 = vmatpush3.bf16.msra.mxu0 %v707_v22 }
  0x3e   : > { %652 = vmatprep.subr.bf16.mxu0 %v751_v16 }
  0x41   : > { %653 = vmatpush3.bf16.msra.mxu0 %v708_v23 }
  0x42   : > { %654 = vmatprep.subr.bf16.mxu0 %v751_v16 }
  0x45   : > { %655 = vmatpush3.bf16.msra.mxu0 %v709_v24 }
  0x48   : > { %657 = vmatmul.mubr.bf16.vlgmr.msra.gmra.mxu0 %v710_v25 }
 0x108   : > { %v433_v26 = vpop.f32.mrf.mxu0 }
 0x109   : > { %v434_v30 = vadd.f32 %v608_v27, %v433_v26 }
 0x10a   : > { %v658_v28 = vpop.f32.mrf.mxu0 }
 0x10c   : > { %v436_v29 = vpop.f32.mrf.mxu0 }
 0x10d   : > { %v437_v31 = vadd.f32 %v608_v27, %v436_v29  ;;  %456 = sbr.rel (!%p808_p6) target bundleno = 282 (0x11a), region = 77 }
 0x10e   : > { %v659_v32 = vpop.f32.mrf.mxu0 }
 0x10f   : > { %v629_v33 = vpack.c.bf16 %v437_v31, %v434_v30 }
 0x111   : > { %630 = vst [vmem:[%s308_s19] sm:$0xff] %v629_v33  }
 0x118   : > { %v478_v34 = vld [vmem:[%s308_s19] sm:$0xf]  ;;  %v480_v35 = vld [vmem:[%s308_s19 + $0x4] sm:$0xf] }
 0x119   : > { %479 = vst [vmem:[%s461_s25] sm:$0xf] %v478_v34  ;;  %481 = vst [vmem:[%s461_s25 + $0xc] sm:$0xf] %v480_v35 }
 0x11a PF: > { %s13_s16 = sadd.s32 1, %s749_s16   ;;  %s880_s12 = smov %s737_s13 }
 0x11b   : > { %p10_p12 = scmp.ge.s32.totalorder %s13_s16, 5   ;;  %s881_s13 = smov %s813_s22 }
 0x11c   : > { %s882_s14 = smov %s745_s15  ;;  %s883_s15 = smov %s885_s17 }
 0x11d   :  { %12 = sbr.rel (!%p10_p12) target bundleno = 3 (0x3), region = 155 }

// kernel: decoder_forward.21
= control target key start
LH: loop header
LB: loop body
LE: loop exit
PB: predicated region body
PF: predicated region fallthrough
CT: control target
= control target key end

     0   :  { %v251_v0 = vmov 0.0   ;;  %vm252_vm0 = vmmov 0   ;;  %s336_s1 = inlined_call_operand.vmem [shape: bf16[128,128], index: 1, kind: input, shape index: {}]   ;;  %s337_s0 = inlined_call_operand.vmem [shape: bf16[16,128], index: 0, kind: input, shape index: {}]   ;;  %s338_s2 = inlined_call_operand.vmem [shape: f32[1,128], index: 2, kind: input, shape index: {}]   ;;  %s339_s3 = inlined_call_operand.vmem [shape: f32[16,128], index: 3, kind: input, shape index: {}]   ;;  %s340_s4 = inlined_call_operand.vmem [shape: f32[1,128], index: 4, kind: input, shape index: {}]   ;;  %s341_s5 = inlined_call_operand.vmem [shape: f32[1,128], index: 5, kind: input, shape index: {}]   ;;  %s342_s6 = inlined_call_operand.vmem [shape: f32[16,128], index: 6, kind: output, shape index: {}]  }
   0x1   :  { %216 = vmatprep.subr.bf16.mxu0 %v251_v0  ;;  %v238_v1 = vld [vmem:[%s336_s1 + $0x38] sm:$0xff]   ;;  %232 = vmatprep.mubr.msk.bf16.mxu0 %vm252_vm0, %v251_v0  ;;  %v239_v2 = vld [vmem:[%s336_s1 + $0x30] sm:$0xff]   ;;  %v240_v3 = vld [vmem:[%s336_s1 + $0x28] sm:$0xff]  }
   0x2   :  { %217 = vmatpush3.bf16.msra.mxu0 %v238_v1  ;;  %v241_v4 = vld [vmem:[%s336_s1 + $0x20] sm:$0xff]   ;;  %v242_v5 = vld [vmem:[%s336_s1 + $0x18] sm:$0xff]   ;;  %v243_v6 = vld [vmem:[%s336_s1 + $0x10] sm:$0xff]  }
   0x3   :  { %218 = vmatprep.subr.bf16.mxu0 %v251_v0  ;;  %v244_v7 = vld [vmem:[%s336_s1 + $0x8] sm:$0xff]   ;;  %v245_v8 = vld [vmem:[%s336_s1] sm:$0xff]  }
   0x4   :  { %v246_v9 = vld [vmem:[%s337_s0] sm:$0xff]   ;;  %v145_v17 = vld [vmem:[%s339_s3 + $0x8] sm:$0xff] }
   0x5   :  { %v195_v10 = vld [vmem:[%s338_s2] ss:$0 sm:$0xff] }
   0x6   :  { %219 = vmatpush3.bf16.msra.mxu0 %v239_v2  ;;  %v144_v12 = vld [vmem:[%s339_s3] sm:$0xff] }
   0x7   :  { %220 = vmatprep.subr.bf16.mxu0 %v251_v0  ;;  %v205_v36 = vld [vmem:[%s340_s4] ss:$0 sm:$0xff] }
   0x8   :  { %v206_v38 = vld [vmem:[%s341_s5] ss:$0 sm:$0xff] }
   0xa   :  { %221 = vmatpush3.bf16.msra.mxu0 %v240_v3 }
   0xb   :  { %222 = vmatprep.subr.bf16.mxu0 %v251_v0 }
   0xe   :  { %223 = vmatpush3.bf16.msra.mxu0 %v241_v4 }
   0xf   :  { %224 = vmatprep.subr.bf16.mxu0 %v251_v0 }
  0x12   :  { %225 = vmatpush3.bf16.msra.mxu0 %v242_v5 }
  0x13   :  { %226 = vmatprep.subr.bf16.mxu0 %v251_v0 }
  0x16   :  { %227 = vmatpush3.bf16.msra.mxu0 %v243_v6 }
  0x17   :  { %228 = vmatprep.subr.bf16.mxu0 %v251_v0 }
  0x1a   :  { %229 = vmatpush3.bf16.msra.mxu0 %v244_v7 }
  0x1b   :  { %230 = vmatprep.subr.bf16.mxu0 %v251_v0 }
  0x1e   :  { %231 = vmatpush3.bf16.msra.mxu0 %v245_v8 }
  0x21   :  { %233 = vmatmul.mubr.bf16.vlgmr.msra.gmra.mxu0 %v246_v9 }
  0xe1   :  { %v137_v11 = vpop.f32.mrf.mxu0 }
  0xe2   :  { %v138_v13 = vadd.f32 %v195_v10, %v137_v11 }
  0xe3   :  { %v234_v14 = vpop.f32.mrf.mxu0 }
  0xe4   :  { %v146_v15 = vadd.f32 %v144_v12, %v138_v13 }
  0xe5   :  { %v140_v16 = vpop.f32.mrf.mxu0 }
  0xe6   :  { %v141_v18 = vadd.f32 %v195_v10, %v140_v16  ;;  %148 = vadd.xlane.f32.xlu0 %v146_v15 }
  0xe7   :  { %v235_v19 = vpop.f32.mrf.mxu0 }
  0xe8   :  { %v147_v20 = vadd.f32 %v145_v17, %v141_v18 }
  0xea   :  { %150 = vadd.xlane.f32.xlu0 %v147_v20 }
 0x16f   :  { %v149_v21 = vpop.xlane.xlu0 %148 }
 0x170   :  { %v153_v22 = vmul.f32 0.0078125, %v149_v21 }
 0x172   :  { %v155_v23 = vsub.f32 %v146_v15, %v153_v22 }
 0x173   :  { %v151_v24 = vpop.xlane.xlu0 %150 }
 0x174   :  { %v154_v25 = vmul.f32 0.0078125, %v151_v24  ;;  %v157_v26 = vmul.f32 %v155_v23, %v155_v23 }
 0x176   :  { %v156_v27 = vsub.f32 %v147_v20, %v154_v25  ;;  %159 = vadd.xlane.f32.xlu1 %v157_v26 }
 0x178   :  { %v158_v28 = vmul.f32 %v156_v27, %v156_v27 }
 0x17a   :  { %161 = vadd.xlane.f32.xlu1 %v158_v28 }
 0x1ff   :  { %v160_v29 = vpop.xlane.xlu1 %159 }
 0x200   :  { %v163_v30 = vmul.f32 0.0078125, %v160_v29 }
 0x202   :  { %v165_v31 = vadd.f32 1e-05, %v163_v30 }
 0x203   :  { %v162_v32 = vpop.xlane.xlu1 %161 }
 0x204   :  { %247 = vrsqrt.f32 %v165_v31  ;;  %v164_v33 = vmul.f32 0.0078125, %v162_v32 }
 0x206   :  { %v166_v34 = vadd.f32 1e-05, %v164_v33 }
 0x208   :  { %249 = vrsqrt.f32 %v166_v34 }
 0x211   :  { %v248_v35 = vpop.eup %247 }
 0x212   :  { %v169_v37 = vmul.f32 %v248_v35, %v155_v23 }
 0x214   :  { %v178_v39 = vmul.f32 %v205_v36, %v169_v37 }
 0x215   :  { %v250_v40 = vpop.eup %249 }
 0x216   :  { %v187_v41 = vadd.f32 %v206_v38, %v178_v39  ;;  %v170_v42 = vmul.f32 %v250_v40, %v156_v27 }
 0x218   :  { %189 = vst [vmem:[%s342_s6] sm:$0xff] %v187_v41  ;;  %v179_v43 = vmul.f32 %v205_v36, %v170_v42 }
 0x21a   :  { %v188_v44 = vadd.f32 %v206_v38, %v179_v43 }
 0x21c   :  { %190 = vst [vmem:[%s342_s6 + $0x8] sm:$0xff] %v188_v44 }

// kernel: decoder_forward.20
= control target key start
LH: loop header
LB: loop body
LE: loop exit
PB: predicated region body
PF: predicated region fallthrough
CT: control target
= control target key end

     0   :  { %s1427_s12 = smov 0   ;;  %s1646_s0 = inlined_call_operand.vmem [shape: bf16[16,8,16], index: 0, kind: input, shape index: {}]   ;;  %s1647_s1 = inlined_call_operand.vmem [shape: bf16[16,8,16], index: 1, kind: input, shape index: {}]   ;;  %s1648_s2 = inlined_call_operand.vmem [shape: bf16[16,8,16], index: 2, kind: input, shape index: {}]   ;;  %s1649_s3 = inlined_call_operand.vmem [shape: bf16[16,8,16], index: 3, kind: output, shape index: {}]  }
   0x1 LB: > { %s1196_s13 = sadd.s32 4294967295, %s1403_s12   ;;  %p1200_p0 = scmp.ge.s32.totalorder %s1403_s12, 1  ;;  %s1403_s12 = sphi %s1427_s12, %s13_s12  }
   0x2   : > { %p160_p1 = scmp.lt.s32.totalorder %s1403_s12, 3 }
   0x4   : > { %p161_p2 = pnand %p1200_p0, %p160_p1 }
   0x5   : > { %s1201_s14 = sshll.u32 (!%p161_p2), %s1196_s13, 3 }
   0x6   : > { %164 = sbr.rel (%p161_p2) target bundleno = 760 (0x2f8), region = 32  ;;  %p195_p3 = scmp.lt.s32.totalorder (!%p161_p2), %s1201_s14, 15 }
   0xb   : > { %v1405_v0 = vmov 0.0   ;;  %vm1406_vm0 = vmmov 0   ;;  %s1653_s14 = smov (!%p195_p3, %s1201_s14), 15  ;;  %vm243_vm1 = vcmask 130048   ;;  %v620_v25 = vlaneseq }
   0xc   : > { %1259 = vmatprep.subr.bf16.mxu0 %v1405_v0  ;;  %1265 = vmatprep.subr.bf16.mxu1 %v1405_v0  ;;  %s1441_s15 = sshll.u32 %s1653_s14, 2  ;;  %vm633_vm3 = vcmask 64512   ;;  %vm733_vm4 = vcmask 1043456   ;;  %vm1107_vm5 = vcmask 125952  }
   0xd   : > { %1261 = vmatprep.mubr.msk.bf16.mxu0 %vm1406_vm0, %v1405_v0  ;;  %1267 = vmatprep.mubr.msk.bf16.mxu1 %vm1406_vm0, %v1405_v0  ;;  %s1447_s18 = scalar_lea.vmem %s1647_s1, %s1441_s15  ;;  %s1457_s21 = scalar_lea.vmem %s1646_s0, %s1441_s15  ;;  %v621_v26 = vshrl.u32 %v620_v25, 7  ;;  %v623_v27 = vand.u32 127, %v620_v25 }
   0xe   : > { %v227_v1 = vld [vmem:[%s1447_s18] sm:$0xf]  ;;  %v228_v2 = vld [vmem:[%s1447_s18 + $0x4] sm:$0xf]  ;;  %v229_v5 = vld [vmem:[%s1447_s18 + $0x8] sm:$0xf]  ;;  %s210_s24 = scalar_lea.vmem %s1648_s2, %s1441_s15  ;;  %s1625_s27 = scalar_lea.vmem %s1649_s3, %s1441_s15 }
   0xf   : > { %v248_v3 = vsel %vm243_vm1, %v227_v1, 0  ;;  %v294_v4 = vsel %vm243_vm1, %v228_v2, 0  ;;  %v230_v6 = vld [vmem:[%s1447_s18 + $0xc] sm:$0xf]  ;;  %v219_v7 = vld [vmem:[%s1457_s21] sm:$0xf]  ;;  %vm1511_vm2 = vcmp.ge.s32.totalorder %v621_v26, %v623_v27 }
  0x10   : > { %1260 = vmatpush3.bf16.xpose.msra.mxu0 %v248_v3  ;;  %1266 = vmatpush3.bf16.xpose.msra.mxu1 %v294_v4  ;;  %v220_v8 = vld [vmem:[%s1457_s21 + $0x4] sm:$0xf]  ;;  %v340_v9 = vsel %vm243_vm1, %v229_v5, 0  ;;  %v386_v10 = vsel %vm243_vm1, %v230_v6, 0  ;;  %v231_v11 = vld [vmem:[%s1447_s18 + $0x10] sm:$0xf] }
  0x11   : > { %1271 = vmatprep.subr.bf16.mxu0 %v1405_v0  ;;  %1277 = vmatprep.subr.bf16.mxu1 %v1405_v0  ;;  %v232_v12 = vld [vmem:[%s1447_s18 + $0x14] sm:$0xf]  ;;  %v221_v13 = vld [vmem:[%s1457_s21 + $0x8] sm:$0xf]  ;;  %v222_v14 = vld [vmem:[%s1457_s21 + $0xc] sm:$0xf] }
  0x12   : > { %v432_v15 = vsel %vm243_vm1, %v231_v11, 0  ;;  %v478_v16 = vsel %vm243_vm1, %v232_v12, 0  ;;  %v233_v17 = vld [vmem:[%s1447_s18 + $0x18] sm:$0xf]  ;;  %v234_v18 = vld [vmem:[%s1447_s18 + $0x1c] sm:$0xf] }
  0x13   : > { %v223_v19 = vld [vmem:[%s1457_s21 + $0x10] sm:$0xf]  ;;  %v224_v20 = vld [vmem:[%s1457_s21 + $0x14] sm:$0xf]  ;;  %v524_v21 = vsel %vm243_vm1, %v233_v17, 0  ;;  %v570_v22 = vsel %vm243_vm1, %v234_v18, 0 }
  0x14   : > { %v225_v23 = vld [vmem:[%s1457_s21 + $0x18] sm:$0xf]  ;;  %v226_v24 = vld [vmem:[%s1457_s21 + $0x1c] sm:$0xf] }
  0x17   : > { %1262 = vmatmul.mubr.msk.bf16.vlgmr.msra.gmra.mxu0 %vm243_vm1, %v219_v7  ;;  %1268 = vmatmul.mubr.msk.bf16.vlgmr.msra.gmra.mxu1 %vm243_vm1, %v220_v8 }
  0x18   : > { %1272 = vmatpush3.bf16.xpose.msra.mxu0 %v340_v9  ;;  %1278 = vmatpush3.bf16.xpose.msra.mxu1 %v386_v10 }
  0x19   : > { %1273 = vmatprep.mubr.msk.bf16.mxu0 %vm1406_vm0, %v1405_v0  ;;  %1279 = vmatprep.mubr.msk.bf16.mxu1 %vm1406_vm0, %v1405_v0 }
  0x1a   : > { %1283 = vmatprep.subr.bf16.mxu0 %v1405_v0  ;;  %1289 = vmatprep.subr.bf16.mxu1 %v1405_v0 }
  0x1f   : > { %1274 = vmatmul.mubr.msk.bf16.vlgmr.msra.gmra.mxu0 %vm243_vm1, %v221_v13  ;;  %1280 = vmatmul.mubr.msk.bf16.vlgmr.msra.gmra.mxu1 %vm243_vm1, %v222_v14 }
  0x20   : > { %1284 = vmatpush3.bf16.xpose.msra.mxu0 %v432_v15  ;;  %1290 = vmatpush3.bf16.xpose.msra.mxu1 %v478_v16 }
  0x21   : > { %1285 = vmatprep.mubr.msk.bf16.mxu0 %vm1406_vm0, %v1405_v0  ;;  %1291 = vmatprep.mubr.msk.bf16.mxu1 %vm1406_vm0, %v1405_v0 }
  0x22   : > { %1295 = vmatprep.subr.bf16.mxu0 %v1405_v0  ;;  %1301 = vmatprep.subr.bf16.mxu1 %v1405_v0 }
  0x27   : > { %1286 = vmatmul.mubr.msk.bf16.vlgmr.msra.gmra.mxu0 %vm243_vm1, %v223_v19  ;;  %1292 = vmatmul.mubr.msk.bf16.vlgmr.msra.gmra.mxu1 %vm243_vm1, %v224_v20 }
  0x28   : > { %1296 = vmatpush3.bf16.xpose.msra.mxu0 %v524_v21  ;;  %1302 = vmatpush3.bf16.xpose.msra.mxu1 %v570_v22 }
  0x29   : > { %1297 = vmatprep.mubr.msk.bf16.mxu0 %vm1406_vm0, %v1405_v0  ;;  %1303 = vmatprep.mubr.msk.bf16.mxu1 %vm1406_vm0, %v1405_v0 }
  0x2a   : > { %1307 = vmatprep.subr.bf16.mxu0 %v1405_v0  ;;  %1313 = vmatprep.subr.bf16.mxu1 %v1405_v0 }
  0x2f   : > { %1298 = vmatmul.mubr.msk.bf16.vlgmr.msra.gmra.mxu0 %vm243_vm1, %v225_v23  ;;  %1304 = vmatmul.mubr.msk.bf16.vlgmr.msra.gmra.mxu1 %vm243_vm1, %v226_v24 }
  0x30   : > { %1309 = vmatprep.mubr.msk.bf16.mxu0 %vm1406_vm0, %v1405_v0  ;;  %1315 = vmatprep.mubr.msk.bf16.mxu1 %vm1406_vm0, %v1405_v0 }
  0xd7   : > { %v284_v28 = vpop.f32.mrf.mxu0  ;;  %v330_v29 = vpop.f32.mrf.mxu1 }
  0xd8   : > { %v612_v31 = vmul.f32 0.25, %v284_v28  ;;  %v613_v32 = vmul.f32 0.25, %v330_v29 }
  0xd9   : > { %v1263_v33 = vpop.f32.mrf.mxu0  ;;  %v1269_v34 = vpop.f32.mrf.mxu1 }
  0xda   : > { %v625_v35 = vsel %vm1511_vm2, %v612_v31, -1e+30  ;;  %v1519_v36 = vsel %vm1511_vm2, %v613_v32, -1e+30 }
  0xdb   : > { %v287_v37 = vpop.f32.mrf.mxu0  ;;  %v333_v38 = vpop.f32.mrf.mxu1  ;;  %v634_v39 = vsel %vm633_vm3, %v625_v35, -inf  ;;  %v637_v42 = vsel %vm633_vm3, %v1519_v36, -inf }
  0xdc   : > { %635 = vmax.xlane.f32.xlu0 %v634_v39 }
  0xdd   : > { %v1264_v40 = vpop.f32.mrf.mxu0  ;;  %v1270_v41 = vpop.f32.mrf.mxu1 }
  0xdf   : > { %v376_v43 = vpop.f32.mrf.mxu0  ;;  %v422_v44 = vpop.f32.mrf.mxu1 }
  0xe0   : > { %v614_v45 = vmul.f32 0.25, %v376_v43  ;;  %v615_v46 = vmul.f32 0.25, %v422_v44  ;;  %638 = vmax.xlane.f32.xlu0 %v637_v42 }
  0xe1   : > { %v1275_v47 = vpop.f32.mrf.mxu0  ;;  %v1281_v48 = vpop.f32.mrf.mxu1 }
  0xe2   : > { %v627_v49 = vsel %vm1511_vm2, %v614_v45, -1e+30  ;;  %v628_v50 = vsel %vm1511_vm2, %v615_v46, -1e+30 }
  0xe3   : > { %v379_v51 = vpop.f32.mrf.mxu0  ;;  %v425_v52 = vpop.f32.mrf.mxu1  ;;  %v640_v53 = vsel %vm633_vm3, %v627_v49, -inf  ;;  %v643_v56 = vsel %vm633_vm3, %v628_v50, -inf }
  0xe4   : > { %641 = vmax.xlane.f32.xlu1 %v640_v53 }
  0xe5   : > { %v1276_v54 = vpop.f32.mrf.mxu0  ;;  %v1282_v55 = vpop.f32.mrf.mxu1 }
  0xe7   : > { %v468_v57 = vpop.f32.mrf.mxu0  ;;  %v514_v58 = vpop.f32.mrf.mxu1 }
  0xe8   : > { %v616_v59 = vmul.f32 0.25, %v468_v57  ;;  %v617_v60 = vmul.f32 0.25, %v514_v58  ;;  %644 = vmax.xlane.f32.xlu1 %v643_v56 }
  0xe9   : > { %v1287_v61 = vpop.f32.mrf.mxu0  ;;  %v1293_v62 = vpop.f32.mrf.mxu1 }
  0xea   : > { %v630_v63 = vsel %vm1511_vm2, %v617_v60, -1e+30  ;;  %v629_v1 = vsel %vm1511_vm2, %v616_v59, -1e+30  ;;  %v235_v61 = vld [vmem:[%s210_s24] sm:$0xf] }
  0xeb   : > { %v471_v2 = vpop.f32.mrf.mxu0  ;;  %v517_v3 = vpop.f32.mrf.mxu1  ;;  %v649_v4 = vsel %vm633_vm3, %v630_v63, -inf  ;;  %v646_v5 = vsel %vm633_vm3, %v629_v1, -inf  ;;  %v236_v62 = vld [vmem:[%s210_s24 + $0x4] sm:$0xf] }
  0xec   : > { %650 = vmax.xlane.f32.xlu1 %v649_v4  ;;  %647 = vmax.xlane.f32.xlu0 %v646_v5  ;;  %v781_v2 = vsel %vm733_vm4, %v236_v62, 0  ;;  %v238_v3 = vld [vmem:[%s210_s24 + $0xc] sm:$0xf]  ;;  %v237_v4 = vld [vmem:[%s210_s24 + $0x8] sm:$0xf] }
  0xed   : > { %v1288_v6 = vpop.f32.mrf.mxu0  ;;  %v1294_v7 = vpop.f32.mrf.mxu1  ;;  %1314 = vmatpush3.bf16.msra.mxu1 %v781_v2  ;;  %v873_v5 = vsel %vm733_vm4, %v238_v3, 0 }
  0xee   : > { %1325 = vmatprep.subr.bf16.mxu1 %v1405_v0  ;;  %v827_v6 = vsel %vm733_vm4, %v237_v4, 0  ;;  %v239_v7 = vld [vmem:[%s210_s24 + $0x10] sm:$0xf] }
  0xef   : > { %v560_v8 = vpop.f32.mrf.mxu0  ;;  %v606_v9 = vpop.f32.mrf.mxu1 }
  0xf0   : > { %v618_v10 = vmul.f32 0.25, %v560_v8  ;;  %v619_v11 = vmul.f32 0.25, %v606_v9  ;;  %v240_v8 = vld [vmem:[%s210_s24 + $0x14] sm:$0xf]  ;;  %v919_v9 = vsel %vm733_vm4, %v239_v7, 0 }
  0xf1   : > { %v1299_v12 = vpop.f32.mrf.mxu0  ;;  %v1305_v13 = vpop.f32.mrf.mxu1 }
  0xf2   : > { %v632_v14 = vsel %vm1511_vm2, %v619_v11, -1e+30  ;;  %v631_v15 = vsel %vm1511_vm2, %v618_v10, -1e+30  ;;  %v965_v10 = vsel %vm733_vm4, %v240_v8, 0 }
  0xf3   : > { %v563_v16 = vpop.f32.mrf.mxu0  ;;  %v609_v17 = vpop.f32.mrf.mxu1  ;;  %v655_v18 = vsel %vm633_vm3, %v632_v14, -inf  ;;  %v652_v19 = vsel %vm633_vm3, %v631_v15, -inf  ;;  %v241_v11 = vld [vmem:[%s210_s24 + $0x18] sm:$0xf]  ;;  %v242_v12 = vld [vmem:[%s210_s24 + $0x1c] sm:$0xf] }
  0xf4   : > { %656 = vmax.xlane.f32.xlu1 %v655_v18  ;;  %653 = vmax.xlane.f32.xlu0 %v652_v19  ;;  %v1011_v13 = vsel %vm733_vm4, %v241_v11, 0 }
  0xf5   : > { %v1300_v20 = vpop.f32.mrf.mxu0  ;;  %v1306_v21 = vpop.f32.mrf.mxu1 }
 0x165   : > { %v636_v22 = vpop.xlane.xlu0 %635 }
 0x166   : > { %v658_v23 = vsub.f32 %v625_v35, %v636_v22 }
 0x168   : > { %v666_v24 = vmul.f32 1.442695, %v658_v23 }
 0x169   : > { %v639_v25 = vpop.xlane.xlu0 %638 }
 0x16a   : > { %1365 = vpow2.f32 %v666_v24  ;;  %v659_v26 = vsub.f32 %v1519_v36, %v639_v25 }
 0x16c   : > { %v668_v27 = vmul.f32 1.442695, %v659_v26 }
 0x16d   : > { %v642_v28 = vpop.xlane.xlu1 %641 }
 0x16e   : > { %1367 = vpow2.f32 %v668_v27  ;;  %v660_v29 = vsub.f32 %v627_v49, %v642_v28 }
 0x170   : > { %v670_v30 = vmul.f32 1.442695, %v660_v29 }
 0x171   : > { %v645_v31 = vpop.xlane.xlu1 %644 }
 0x172   : > { %1369 = vpow2.f32 %v670_v30  ;;  %v661_v32 = vsub.f32 %v628_v50, %v645_v31 }
 0x174   : > { %v672_v33 = vmul.f32 1.442695, %v661_v32 }
 0x175   : > { %v651_v34 = vpop.xlane.xlu1 %650  ;;  %v648_v37 = vpop.xlane.xlu0 %647 }
 0x176   : > { %1371 = vpow2.f32 %v672_v33  ;;  %v663_v38 = vsub.f32 %v630_v63, %v651_v34  ;;  %v662_v39 = vsub.f32 %v629_v1, %v648_v37  ;;  %v735_v1 = vsel %vm733_vm4, %v235_v61, 0 }
 0x177   : > { %v1543_v35 = vpop.eup %1365  ;;  %1308 = vmatpush3.bf16.msra.mxu0 %v735_v1 }
 0x178   : > { %v676_v40 = vmul.f32 1.442695, %v663_v38  ;;  %v674_v41 = vmul.f32 1.442695, %v662_v39  ;;  %v682_v36 = vsel %vm633_vm3, %v1543_v35, 0.0  ;;  %1319 = vmatprep.subr.bf16.mxu0 %v1405_v0 }
 0x179   : > { %683 = vadd.xlane.f32.xlu0 %v682_v36 }
 0x17a   : > { %1373 = vpow2.f32 %v676_v40 }
 0x17b   : > { %v1547_v42 = vpop.eup %1367  ;;  %1375 = vpow2.f32 %v674_v41 }
 0x17c   : > { %v685_v43 = vsel %vm633_vm3, %v1547_v42, 0.0 }
 0x17d   : > { %686 = vadd.xlane.f32.xlu1 %v685_v43  ;;  %v657_v44 = vpop.xlane.xlu1 %656  ;;  %v654_v45 = vpop.xlane.xlu0 %653 }
 0x17e   : > { %v665_v46 = vsub.f32 %v632_v14, %v657_v44  ;;  %v664_v47 = vsub.f32 %v631_v15, %v654_v45  ;;  %v1057_v14 = vsel %vm733_vm4, %v242_v12, 0 }
 0x17f   : > { %v1551_v48 = vpop.eup %1369 }
 0x180   : > { %v680_v49 = vmul.f32 1.442695, %v665_v46  ;;  %v678_v50 = vmul.f32 1.442695, %v664_v47  ;;  %v688_v51 = vsel %vm633_vm3, %v1551_v48, 0.0 }
 0x181   : > { %689 = vadd.xlane.f32.xlu0 %v688_v51 }
 0x182   : > { %1377 = vpow2.f32 %v680_v49 }
 0x183   : > { %v1555_v52 = vpop.eup %1371  ;;  %1379 = vpow2.f32 %v678_v50 }
 0x184   : > { %v691_v53 = vsel %vm633_vm3, %v1555_v52, 0.0 }
 0x185   : > { %692 = vadd.xlane.f32.xlu1 %v691_v53 }
 0x187   : > { %v1559_v54 = vpop.eup %1373 }
 0x188   : > { %v1561_v55 = vpop.eup %1375  ;;  %v697_v56 = vsel %vm633_vm3, %v1559_v54, 0.0 }
 0x189   : > { %698 = vadd.xlane.f32.xlu1 %v697_v56  ;;  %v694_v57 = vsel %vm633_vm3, %v1561_v55, 0.0 }
 0x18a   : > { %695 = vadd.xlane.f32.xlu0 %v694_v57 }
 0x18f   : > { %v1567_v58 = vpop.eup %1377 }
 0x190   : > { %v1573_v59 = vpop.eup %1379  ;;  %v703_v60 = vsel %vm633_vm3, %v1567_v58, 0.0 }
 0x191   : > { %704 = vadd.xlane.f32.xlu1 %v703_v60  ;;  %v700_v63 = vsel %vm633_vm3, %v1573_v59, 0.0 }
 0x192   : > { %701 = vadd.xlane.f32.xlu0 %v700_v63 }
 0x202   : > { %v684_v15 = vpop.xlane.xlu0 %683 }
 0x203   : > { %1381 = vrcp.f32 %v684_v15 }
 0x206   : > { %v687_v16 = vpop.xlane.xlu1 %686 }
 0x207   : > { %1383 = vrcp.f32 %v687_v16 }
 0x20a   : > { %v690_v17 = vpop.xlane.xlu0 %689 }
 0x20b   : > { %1385 = vrcp.f32 %v690_v17 }
 0x20e   : > { %v693_v18 = vpop.xlane.xlu1 %692 }
 0x20f   : > { %1387 = vrcp.f32 %v693_v18 }
 0x210   : > { %v1382_v19 = vpop.eup %1381 }
 0x211   : > { %v714_v20 = vmul.f32 %v1382_v19, %v1543_v35 }
 0x212   : > { %v699_v21 = vpop.xlane.xlu1 %698 }
 0x213   : > { %1389 = vrcp.f32 %v699_v21  ;;  %v696_v22 = vpop.xlane.xlu0 %695  ;;  %v722_v23 = vpack.c.bf16 %v714_v20, %v714_v20 }
 0x214   : > { %v1384_v24 = vpop.eup %1383  ;;  %1391 = vrcp.f32 %v696_v22 }
 0x215   : > { %1310 = vmatmul.mubr.msk.bf16.vlgmr.msra.gmra.mxu0 %vm633_vm3, %v722_v23  ;;  %v715_v25 = vmul.f32 %v1384_v24, %v1547_v42 }
 0x216   : > { %1320 = vmatpush3.bf16.msra.mxu0 %v827_v6  ;;  %1321 = vmatprep.mubr.msk.bf16.mxu0 %vm1406_vm0, %v1405_v0 }
 0x217   : > { %v723_v26 = vpack.c.bf16 %v715_v25, %v715_v25  ;;  %1331 = vmatprep.subr.bf16.mxu0 %v1405_v0 }
 0x218   : > { %v1386_v27 = vpop.eup %1385 }
 0x219   : > { %1316 = vmatmul.mubr.msk.bf16.vlgmr.msra.gmra.mxu1 %vm633_vm3, %v723_v26  ;;  %v716_v28 = vmul.f32 %v1386_v27, %v1551_v48 }
 0x21a   : > { %1326 = vmatpush3.bf16.msra.mxu1 %v873_v5  ;;  %v705_v29 = vpop.xlane.xlu1 %704  ;;  %1327 = vmatprep.mubr.msk.bf16.mxu1 %vm1406_vm0, %v1405_v0 }
 0x21b   : > { %1393 = vrcp.f32 %v705_v29  ;;  %v702_v30 = vpop.xlane.xlu0 %701  ;;  %v724_v31 = vpack.c.bf16 %v716_v28, %v716_v28  ;;  %1337 = vmatprep.subr.bf16.mxu1 %v1405_v0 }
 0x21c   : > { %v1388_v32 = vpop.eup %1387  ;;  %1395 = vrcp.f32 %v702_v30 }
 0x21d   : > { %1322 = vmatmul.mubr.msk.bf16.vlgmr.msra.gmra.mxu0 %vm633_vm3, %v724_v31  ;;  %v717_v33 = vmul.f32 %v1388_v32, %v1555_v52 }
 0x21e   : > { %1332 = vmatpush3.bf16.msra.mxu0 %v919_v9  ;;  %1333 = vmatprep.mubr.msk.bf16.mxu0 %vm1406_vm0, %v1405_v0 }
 0x21f   : > { %v725_v34 = vpack.c.bf16 %v717_v33, %v717_v33  ;;  %1343 = vmatprep.subr.bf16.mxu0 %v1405_v0 }
 0x220   : > { %v1390_v37 = vpop.eup %1389 }
 0x221   : > { %v1392_v38 = vpop.eup %1391  ;;  %1328 = vmatmul.mubr.msk.bf16.vlgmr.msra.gmra.mxu1 %vm633_vm3, %v725_v34  ;;  %v719_v35 = vmul.f32 %v1390_v37, %v1559_v54 }
 0x222   : > { %1338 = vmatpush3.bf16.msra.mxu1 %v965_v10  ;;  %v718_v39 = vmul.f32 %v1392_v38, %v1561_v55  ;;  %1339 = vmatprep.mubr.msk.bf16.mxu1 %vm1406_vm0, %v1405_v0 }
 0x223   : > { %1349 = vmatprep.subr.bf16.mxu1 %v1405_v0  ;;  %v727_v41 = vpack.c.bf16 %v719_v35, %v719_v35 }
 0x224   : > { %v726_v40 = vpack.c.bf16 %v718_v39, %v718_v39 }
 0x226   : > { %1334 = vmatmul.mubr.msk.bf16.vlgmr.msra.gmra.mxu0 %vm633_vm3, %v726_v40 }
 0x227   : > { %1344 = vmatpush3.bf16.msra.mxu0 %v1011_v13  ;;  %1345 = vmatprep.mubr.msk.bf16.mxu0 %vm1406_vm0, %v1405_v0 }
 0x228   : > { %v1394_v36 = vpop.eup %1393 }
 0x229   : > { %v1396_v42 = vpop.eup %1395  ;;  %1340 = vmatmul.mubr.msk.bf16.vlgmr.msra.gmra.mxu1 %vm633_vm3, %v727_v41  ;;  %v721_v44 = vmul.f32 %v1394_v36, %v1567_v58 }
 0x22a   : > { %1350 = vmatpush3.bf16.msra.mxu1 %v1057_v14  ;;  %v720_v43 = vmul.f32 %v1396_v42, %v1573_v59  ;;  %1351 = vmatprep.mubr.msk.bf16.mxu1 %vm1406_vm0, %v1405_v0 }
 0x22b   : > { %v729_v46 = vpack.c.bf16 %v721_v44, %v721_v44 }
 0x22c   : > { %v728_v45 = vpack.c.bf16 %v720_v43, %v720_v43 }
 0x22e   : > { %1346 = vmatmul.mubr.msk.bf16.vlgmr.msra.gmra.mxu0 %vm633_vm3, %v728_v45 }
 0x231   : > { %1352 = vmatmul.mubr.msk.bf16.vlgmr.msra.gmra.mxu1 %vm633_vm3, %v729_v46 }
 0x2d5   : > { %v771_v47 = vpop.f32.mrf.mxu0 }
 0x2d6   : > { %v1099_v48 = vpack.c.bf16 %v771_v47, %v771_v47 }
 0x2d7   : > { %v1311_v0 = vpop.f32.mrf.mxu0 }
 0x2d8   : > { %1108 = vst.msk [vmem:[%s1625_s27] sm:$0xf] %vm1107_vm5, %v1099_v48 }
 0x2d9   : > { %v774_v49 = vpop.f32.mrf.mxu0  ;;  %v817_v50 = vpop.f32.mrf.mxu1 }
 0x2da   : > { %v1100_v51 = vpack.c.bf16 %v817_v50, %v817_v50 }
 0x2db   : > { %v1312_v52 = vpop.f32.mrf.mxu0  ;;  %v1317_v53 = vpop.f32.mrf.mxu1 }
 0x2dc   : > { %1109 = vst.msk [vmem:[%s1625_s27 + $0x4] sm:$0xf] %vm1107_vm5, %v1100_v51 }
 0x2dd   : > { %v820_v54 = vpop.f32.mrf.mxu1  ;;  %v863_v55 = vpop.f32.mrf.mxu0 }
 0x2de   : > { %v1101_v56 = vpack.c.bf16 %v863_v55, %v863_v55 }
 0x2df   : > { %v1318_v57 = vpop.f32.mrf.mxu1  ;;  %v1323_v58 = vpop.f32.mrf.mxu0 }
 0x2e0   : > { %1110 = vst.msk [vmem:[%s1625_s27 + $0x8] sm:$0xf] %vm1107_vm5, %v1101_v56 }
 0x2e1   : > { %v866_v59 = vpop.f32.mrf.mxu0  ;;  %v909_v60 = vpop.f32.mrf.mxu1 }
 0x2e2   : > { %v1102_v61 = vpack.c.bf16 %v909_v60, %v909_v60 }
 0x2e3   : > { %v1324_v62 = vpop.f32.mrf.mxu0  ;;  %v1329_v63 = vpop.f32.mrf.mxu1 }
 0x2e4   : > { %1111 = vst.msk [vmem:[%s1625_s27 + $0xc] sm:$0xf] %vm1107_vm5, %v1102_v61 }
 0x2e5   : > { %v912_v1 = vpop.f32.mrf.mxu1 }
 0x2e6   : > { %v955_v2 = vpop.f32.mrf.mxu0 }
 0x2e7   : > { %v1103_v3 = vpack.c.bf16 %v955_v2, %v955_v2  ;;  %v1330_v4 = vpop.f32.mrf.mxu1 }
 0x2e8   : > { %v1335_v5 = vpop.f32.mrf.mxu0 }
 0x2e9   : > { %1112 = vst.msk [vmem:[%s1625_s27 + $0x10] sm:$0xf] %vm1107_vm5, %v1103_v3  ;;  %v1001_v6 = vpop.f32.mrf.mxu1 }
 0x2ea   : > { %v958_v7 = vpop.f32.mrf.mxu0  ;;  %v1104_v8 = vpack.c.bf16 %v1001_v6, %v1001_v6 }
 0x2eb   : > { %v1341_v9 = vpop.f32.mrf.mxu1 }
 0x2ec   : > { %1113 = vst.msk [vmem:[%s1625_s27 + $0x14] sm:$0xf] %vm1107_vm5, %v1104_v8  ;;  %v1336_v10 = vpop.f32.mrf.mxu0 }
 0x2ed   : > { %v1004_v11 = vpop.f32.mrf.mxu1 }
 0x2ee   : > { %v1047_v12 = vpop.f32.mrf.mxu0 }
 0x2ef   : > { %v1105_v13 = vpack.c.bf16 %v1047_v12, %v1047_v12  ;;  %v1342_v14 = vpop.f32.mrf.mxu1 }
 0x2f0   : > { %v1347_v15 = vpop.f32.mrf.mxu0 }
 0x2f1   : > { %1114 = vst.msk [vmem:[%s1625_s27 + $0x18] sm:$0xf] %vm1107_vm5, %v1105_v13  ;;  %v1093_v16 = vpop.f32.mrf.mxu1 }
 0x2f2   : > { %v1050_v17 = vpop.f32.mrf.mxu0  ;;  %v1106_v18 = vpack.c.bf16 %v1093_v16, %v1093_v16 }
 0x2f3   : > { %v1353_v19 = vpop.f32.mrf.mxu1 }
 0x2f4   : > { %1115 = vst.msk [vmem:[%s1625_s27 + $0x1c] sm:$0xf] %vm1107_vm5, %v1106_v18  ;;  %v1348_v20 = vpop.f32.mrf.mxu0 }
 0x2f5   : > { %v1096_v21 = vpop.f32.mrf.mxu1 }
 0x2f7   : > { %v1354_v22 = vpop.f32.mrf.mxu1 }
 0x2f8 PF: > { %s13_s12 = sadd.s32 1, %s1403_s12  }
 0x2f9   : > { %p10_p4 = scmp.ge.s32.totalorder %s13_s12, 4  }
 0x2fb   :  { %12 = sbr.rel (!%p10_p4) target bundleno = 1 (0x1), region = 68 }

// kernel: decoder_forward.23
= control target key start
LH: loop header
LB: loop body
LE: loop exit
PB: predicated region body
PF: predicated region fallthrough
CT: control target
= control target key end

     0   :  { %v293_v1 = vmov 0   ;;  %v37_v19 = vlaneseq  ;;  %s383_s1 = inlined_call_operand.vmem [shape: bf16[128,256], index: 1, kind: input, shape index: {}]   ;;  %s384_s0 = inlined_call_operand.vmem [shape: bf16[32,128], index: 0, kind: input, shape index: {}]   ;;  %s385_s2 = inlined_call_operand.vmem [shape: f32[1,256], index: 2, kind: input, shape index: {}]   ;;  %s386_s3 = inlined_call_operand.vmem [shape: bf16[32,256], index: 3, kind: output, shape index: {}]  }
   0x1   :  { %v267_v0 = vld [vmem:[%s383_s1 + $0x74] ss:$8 sps:$4 sm:$0xff]   ;;  %171 = vmatprep.mubr.bf16.mxu0 %v293_v1  ;;  %181 = vmatprep.mubr.bf16.mxu1 %v293_v1  ;;  %v269_v2 = vld [vmem:[%s383_s1 + $0x70] ss:$8 sps:$4 sm:$0xff]   ;;  %v270_v3 = vld [vmem:[%s383_s1 + $0x64] ss:$8 sps:$4 sm:$0xff]  }
   0x2   :  { %139 = vmatprep.subr.bf16.mxu0 %v267_v0  ;;  %250 = vmatprep.subr.bf16.mxu1 %v267_v0  ;;  %v272_v4 = vld [vmem:[%s383_s1 + $0x60] ss:$8 sps:$4 sm:$0xff]   ;;  %v273_v5 = vld [vmem:[%s383_s1 + $0x54] ss:$8 sps:$4 sm:$0xff]   ;;  %v275_v6 = vld [vmem:[%s383_s1 + $0x50] ss:$8 sps:$4 sm:$0xff]  }
   0x3   :  { %140 = vmatpush1.bf16.msra.mxu0 %v269_v2  ;;  %258 = vmatpush1.bf16.msra.mxu1 %v269_v2  ;;  %v276_v7 = vld [vmem:[%s383_s1 + $0x44] ss:$8 sps:$4 sm:$0xff]   ;;  %v278_v8 = vld [vmem:[%s383_s1 + $0x40] ss:$8 sps:$4 sm:$0xff]   ;;  %v279_v9 = vld [vmem:[%s383_s1 + $0x34] ss:$8 sps:$4 sm:$0xff]  }
   0x4   :  { %141 = vmatprep.subr.bf16.mxu0 %v270_v3  ;;  %251 = vmatprep.subr.bf16.mxu1 %v270_v3  ;;  %v281_v10 = vld [vmem:[%s383_s1 + $0x30] ss:$8 sps:$4 sm:$0xff]   ;;  %v282_v11 = vld [vmem:[%s383_s1 + $0x24] ss:$8 sps:$4 sm:$0xff]   ;;  %v284_v12 = vld [vmem:[%s383_s1 + $0x20] ss:$8 sps:$4 sm:$0xff]  }
   0x5   :  { %v285_v13 = vld [vmem:[%s383_s1 + $0x14] ss:$8 sps:$4 sm:$0xff]   ;;  %v287_v14 = vld [vmem:[%s383_s1 + $0x10] ss:$8 sps:$4 sm:$0xff]   ;;  %v288_v15 = vld [vmem:[%s383_s1 + $0x4] ss:$8 sps:$4 sm:$0xff]  }
   0x6   :  { %v290_v16 = vld [vmem:[%s383_s1] ss:$8 sps:$4 sm:$0xff]   ;;  %v38_v20 = vshrl.u32 %v37_v19, 7 }
   0x7   :  { %142 = vmatpush1.bf16.msra.mxu0 %v272_v4  ;;  %259 = vmatpush1.bf16.msra.mxu1 %v272_v4  ;;  %v291_v17 = vld [vmem:[%s384_s0] sm:$0xff]   ;;  %v292_v18 = vld [vmem:[%s384_s0 + $0x8] sm:$0xff]  }
   0x8   :  { %143 = vmatprep.subr.bf16.mxu0 %v273_v5  ;;  %252 = vmatprep.subr.bf16.mxu1 %v273_v5  ;;  %v39_v21 = vsub.s32 0, %v38_v20  ;;  %v43_v22 = vsub.s32 1, %v38_v20  ;;  %v35_v23 = vld [vmem:[%s385_s2] sm:$0x3] }
   0xa   :  { %v40_v24 = vrot.slane %v35_v23, %v39_v21  ;;  %v44_v25 = vrot.slane %v35_v23, %v43_v22 }
   0xb   :  { %144 = vmatpush1.bf16.msra.mxu0 %v275_v6  ;;  %260 = vmatpush1.bf16.msra.mxu1 %v275_v6 }
   0xc   :  { %145 = vmatprep.subr.bf16.mxu0 %v276_v7  ;;  %253 = vmatprep.subr.bf16.mxu1 %v276_v7 }
   0xf   :  { %146 = vmatpush1.bf16.msra.mxu0 %v278_v8  ;;  %261 = vmatpush1.bf16.msra.mxu1 %v278_v8 }
  0x10   :  { %147 = vmatprep.subr.bf16.mxu0 %v279_v9  ;;  %254 = vmatprep.subr.bf16.mxu1 %v279_v9 }
  0x13   :  { %148 = vmatpush1.bf16.msra.mxu0 %v281_v10  ;;  %262 = vmatpush1.bf16.msra.mxu1 %v281_v10 }
  0x14   :  { %149 = vmatprep.subr.bf16.mxu0 %v282_v11  ;;  %255 = vmatprep.subr.bf16.mxu1 %v282_v11 }
  0x17   :  { %150 = vmatpush1.bf16.msra.mxu0 %v284_v12  ;;  %263 = vmatpush1.bf16.msra.mxu1 %v284_v12 }
  0x18   :  { %151 = vmatprep.subr.bf16.mxu0 %v285_v13  ;;  %256 = vmatprep.subr.bf16.mxu1 %v285_v13 }
  0x1b   :  { %152 = vmatpush1.bf16.msra.mxu0 %v287_v14  ;;  %264 = vmatpush1.bf16.msra.mxu1 %v287_v14 }
  0x1c   :  { %153 = vmatprep.subr.bf16.mxu0 %v288_v15  ;;  %257 = vmatprep.subr.bf16.mxu1 %v288_v15 }
  0x1f   :  { %154 = vmatpush1.bf16.msra.mxu0 %v290_v16  ;;  %265 = vmatpush1.bf16.msra.mxu1 %v290_v16 }
  0x22   :  { %172 = vmatmul.mubr.bf16.vlgmr.msra.gmra.mxu0 %v291_v17  ;;  %182 = vmatmul.mubr.bf16.vlgmr.msra.gmra.mxu1 %v292_v18 }
  0xe2   :  { %v173_v26 = vpop.f32.mrf.mxu0  ;;  %v183_v27 = vpop.f32.mrf.mxu1 }
  0xe3   :  { %v174_v30 = vadd.f32 %v173_v26, %v40_v24  ;;  %v184_v31 = vadd.f32 %v183_v27, %v40_v24 }
  0xe4   :  { %v175_v28 = vpop.f32.mrf.mxu0  ;;  %v185_v29 = vpop.f32.mrf.mxu1 }
  0xe5   :  { %v176_v32 = vadd.f32 %v175_v28, %v44_v25  ;;  %v186_v33 = vadd.f32 %v185_v29, %v44_v25 }
  0xe6   :  { %v177_v34 = vpop.f32.mrf.mxu0  ;;  %v187_v35 = vpop.f32.mrf.mxu1 }
  0xe7   :  { %v246_v36 = vpack.c.bf16 %v176_v32, %v174_v30  ;;  %v248_v37 = vpack.c.bf16 %v186_v33, %v184_v31  ;;  %v178_v40 = vadd.f32 %v177_v34, %v40_v24  ;;  %v188_v41 = vadd.f32 %v187_v35, %v40_v24 }
  0xe8   :  { %v179_v38 = vpop.f32.mrf.mxu0  ;;  %v189_v39 = vpop.f32.mrf.mxu1 }
  0xe9   :  { %216 = vst [vmem:[%s386_s3] sm:$0xff] %v246_v36  ;;  %218 = vst [vmem:[%s386_s3 + $0x10] sm:$0xff] %v248_v37  ;;  %v180_v42 = vadd.f32 %v179_v38, %v44_v25  ;;  %v190_v43 = vadd.f32 %v189_v39, %v44_v25 }
  0xeb   :  { %v247_v44 = vpack.c.bf16 %v180_v42, %v178_v40  ;;  %v249_v45 = vpack.c.bf16 %v190_v43, %v188_v41 }
  0xed   :  { %217 = vst [vmem:[%s386_s3 + $0x8] sm:$0xff] %v247_v44  ;;  %219 = vst [vmem:[%s386_s3 + $0x18] sm:$0xff] %v249_v45 }

// kernel: decoder_forward.26
= control target key start
LH: loop header
LB: loop body
LE: loop exit
PB: predicated region body
PF: predicated region fallthrough
CT: control target
= control target key end

     0   :  { %s806_s12 = smov 0   ;;  %s808_s13 = smov 0   ;;  %s907_s0 = inlined_call_operand.vmem [shape: bf16[16,128], index: 0, kind: input, shape index: {}]   ;;  %s908_s1 = inlined_call_operand.vmem [shape: bf16[128,512], index: 1, kind: input, shape index: {}]   ;;  %s909_s2 = inlined_call_operand.vmem [shape: f32[1,512], index: 2, kind: input, shape index: {}]   ;;  %s910_s3 = inlined_call_operand.vmem [shape: bf16[16,512], index: 3, kind: output, shape index: {}]  }
   0x1   :  { %s810_s14 = smov 0   ;;  %s812_s15 = smov 0  }
   0x2   :  { %s814_s16 = smov 0  }
   0x3 LB: > { %s22_s17 = sadd.s32 1, %s779_s15  ;;  %s639_s18 = sadd.s32 4294967295, %s783_s16   ;;  %s783_s16 = sphi %s814_s16, %s13_s16   ;;  %s779_s15 = sphi %s812_s15, %s915_s15   ;;  %s775_s14 = sphi %s810_s14, %s914_s14   ;;  %s771_s13 = sphi %s808_s13, %s913_s13   ;;  %s767_s12 = sphi %s806_s12, %s912_s12  }
   0x4   : > { %p23_p0 = scmp.ge.s32.totalorder %s22_s17, 2  ;;  %p65_p1 = scmp.ne.s32.totalorder %s771_s13, %s767_s12 }
   0x5   : > { %p66_p2 = scmp.eq.s32.totalorder %s783_s16, 0  ;;  %p123_p4 = scmp.eq.s32.totalorder %s639_s18, 1 }
   0x6   : > { %s917_s17 = smov (%p23_p0, %s22_s17), 0  ;;  %s58_s20 = sadd.s32 1, %s771_s13 }
   0x7   : > { %p67_p3 = por %p66_p2, %p65_p1  ;;  %s55_s19 = ssub.s32 %s779_s15, %s917_s17 }
   0x8   : > { %p56_p5 = scmp.eq.s32.totalorder %s55_s19, 0  ;;  %p841_p6 = por %p123_p4, %p65_p1 }
   0x9   : > { %p643_p7 = scmp.ge.s32.totalorder %s783_s16, 2 }
   0xa   : > { %s846_s22 = scalar_select %p56_p5, %s771_s13, %s58_s20  }
   0xb   : > { %154 = sbr.rel (%p643_p7) target bundleno = 28 (0x1c), region = 20 }
  0x10   : > { %157 = sbr.rel (!%p67_p3) target bundleno = 28 (0x1c), region = 24  ;;  %s159_s23 = sand.u32 (%p67_p3), 1, %s771_s13  }
  0x11   : > { %s675_s24 = sshll.u32 (%p67_p3), %s779_s15, 3  ;;  %s644_s25 = sshll.u32 (%p67_p3), %s159_s23, 7 }
  0x12   : > { %s854_s28 = scalar_lea.vmem (%p67_p3), %s908_s1, %s675_s24  ;;  %s161_s29 = scalar_lea.vmem (%p67_p3), [#allocation2], %s644_s25 }
  0x13   : > { %v223_v0 = vld [vmem:[%s854_s28] sm:$0xff] (%p67_p3)  ;;  %v225_v1 = vld [vmem:[%s854_s28 + $0x10] sm:$0xff] (%p67_p3) }
  0x14   : > { %v227_v2 = vld [vmem:[%s854_s28 + $0x20] sm:$0xff] (%p67_p3)  ;;  %224 = vst [vmem:[%s161_s29] sm:$0xff] (%p67_p3), %v223_v0  ;;  %226 = vst [vmem:[%s161_s29 + $0x8] sm:$0xff] (%p67_p3), %v225_v1  ;;  %v229_v3 = vld [vmem:[%s854_s28 + $0x30] sm:$0xff] (%p67_p3) }
  0x15   : > { %228 = vst [vmem:[%s161_s29 + $0x10] sm:$0xff] %v227_v2  ;;  %v231_v4 = vld [vmem:[%s854_s28 + $0x40] sm:$0xff]  ;;  %v233_v5 = vld [vmem:[%s854_s28 + $0x50] sm:$0xff]  ;;  %230 = vst [vmem:[%s161_s29 + $0x18] sm:$0xff] %v229_v3 }
  0x16   : > { %232 = vst [vmem:[%s161_s29 + $0x20] sm:$0xff] %v231_v4  ;;  %234 = vst [vmem:[%s161_s29 + $0x28] sm:$0xff] %v233_v5  ;;  %v235_v6 = vld [vmem:[%s854_s28 + $0x60] sm:$0xff]  ;;  %v237_v7 = vld [vmem:[%s854_s28 + $0x70] sm:$0xff] }
  0x17   : > { %v239_v8 = vld [vmem:[%s854_s28 + $0x80] sm:$0xff]  ;;  %236 = vst [vmem:[%s161_s29 + $0x30] sm:$0xff] %v235_v6  ;;  %238 = vst [vmem:[%s161_s29 + $0x38] sm:$0xff] %v237_v7  ;;  %v241_v9 = vld [vmem:[%s854_s28 + $0x90] sm:$0xff] }
  0x18   : > { %240 = vst [vmem:[%s161_s29 + $0x40] sm:$0xff] %v239_v8  ;;  %v243_v10 = vld [vmem:[%s854_s28 + $0xa0] sm:$0xff]  ;;  %v245_v11 = vld [vmem:[%s854_s28 + $0xb0] sm:$0xff]  ;;  %242 = vst [vmem:[%s161_s29 + $0x48] sm:$0xff] %v241_v9 }
  0x19   : > { %244 = vst [vmem:[%s161_s29 + $0x50] sm:$0xff] %v243_v10  ;;  %246 = vst [vmem:[%s161_s29 + $0x58] sm:$0xff] %v245_v11  ;;  %v247_v12 = vld [vmem:[%s854_s28 + $0xc0] sm:$0xff]  ;;  %v249_v13 = vld [vmem:[%s854_s28 + $0xd0] sm:$0xff] }
  0x1a   : > { %v251_v14 = vld [vmem:[%s854_s28 + $0xe0] sm:$0xff]  ;;  %248 = vst [vmem:[%s161_s29 + $0x60] sm:$0xff] %v247_v12  ;;  %250 = vst [vmem:[%s161_s29 + $0x68] sm:$0xff] %v249_v13  ;;  %v253_v15 = vld [vmem:[%s854_s28 + $0xf0] sm:$0xff] }
  0x1b   : > { %252 = vst [vmem:[%s161_s29 + $0x70] sm:$0xff] %v251_v14  ;;  %254 = vst [vmem:[%s161_s29 + $0x78] sm:$0xff] %v253_v15 }
  0x1c PF: > { %p647_p8 = scmp.ge.s32.totalorder %s783_s16, 1  ;;  %p267_p9 = scmp.lt.s32.totalorder %s783_s16, 3 }
  0x1e   : > { %p268_p10 = pnand %p647_p8, %p267_p9 }
  0x1f   : > { %s274_s30 = sand.u32 (!%p268_p10), 1, %s767_s12   ;;  %s650_s8 = sshll.u32 (!%p268_p10), %s775_s14, 1 }
  0x20   : > { %271 = sbr.rel (%p268_p10) target bundleno = 284 (0x11c), region = 66  ;;  %s648_s4 = sshll.u32 (!%p268_p10), %s274_s30, 7 }
  0x21   : > { %s276_s5 = scalar_lea.vmem (!%p268_p10), [#allocation2], %s648_s4  ;;  %p313_p11 = scmp.lt.s32.totalorder (!%p268_p10), %s650_s8, 3 }
  0x22   : > { %s649_s18 = sshll.u32 (!%p268_p10), %s274_s30, 4 }
  0x23   : > { %s304_s19 = scalar_lea.vmem (!%p268_p10), [#allocation3], %s649_s18 }
  0x25   : > { %v785_v16 = vmov 0   ;;  %v720_v17 = vld [vmem:[%s276_s5 + $0x74] ss:$8 sps:$4 sm:$0xff]   ;;  %v722_v18 = vld [vmem:[%s276_s5 + $0x70] ss:$8 sps:$4 sm:$0xff]   ;;  %v744_v33 = vld [vmem:[%s907_s0] sm:$0xff]   ;;  %v340_v34 = vlaneseq }
  0x26   : > { %468 = vmatprep.mubr.bf16.mxu0 %v785_v16  ;;  %436 = vmatprep.subr.bf16.mxu0 %v720_v17  ;;  %v723_v19 = vld [vmem:[%s276_s5 + $0x64] ss:$8 sps:$4 sm:$0xff]   ;;  %v725_v20 = vld [vmem:[%s276_s5 + $0x60] ss:$8 sps:$4 sm:$0xff]   ;;  %v726_v21 = vld [vmem:[%s276_s5 + $0x54] ss:$8 sps:$4 sm:$0xff]  }
  0x27   : > { %437 = vmatpush1.bf16.msra.mxu0 %v722_v18  ;;  %v728_v22 = vld [vmem:[%s276_s5 + $0x50] ss:$8 sps:$4 sm:$0xff]   ;;  %v729_v23 = vld [vmem:[%s276_s5 + $0x44] ss:$8 sps:$4 sm:$0xff]   ;;  %v731_v24 = vld [vmem:[%s276_s5 + $0x40] ss:$8 sps:$4 sm:$0xff]  }
  0x28   : > { %438 = vmatprep.subr.bf16.mxu0 %v723_v19  ;;  %v732_v25 = vld [vmem:[%s276_s5 + $0x34] ss:$8 sps:$4 sm:$0xff]   ;;  %v734_v26 = vld [vmem:[%s276_s5 + $0x30] ss:$8 sps:$4 sm:$0xff]   ;;  %v735_v27 = vld [vmem:[%s276_s5 + $0x24] ss:$8 sps:$4 sm:$0xff]  }
  0x29   : > { %v737_v28 = vld [vmem:[%s276_s5 + $0x20] ss:$8 sps:$4 sm:$0xff]   ;;  %v738_v29 = vld [vmem:[%s276_s5 + $0x14] ss:$8 sps:$4 sm:$0xff]   ;;  %v740_v30 = vld [vmem:[%s276_s5 + $0x10] ss:$8 sps:$4 sm:$0xff]  }
  0x2a   : > { %v741_v31 = vld [vmem:[%s276_s5 + $0x4] ss:$8 sps:$4 sm:$0xff]   ;;  %v743_v32 = vld [vmem:[%s276_s5] ss:$8 sps:$4 sm:$0xff]   ;;  %s919_s8 = smov (!%p313_p11, %s650_s8), 3  ;;  %v341_v35 = vshrl.u32 %v340_v34, 7 }
  0x2b   : > { %439 = vmatpush1.bf16.msra.mxu0 %v725_v20  ;;  %s315_s11 = scalar_lea.vmem %s909_s2, %s919_s8  ;;  %s678_s12 = sshll.u32 (%p841_p6), %s775_s14, 3 }
  0x2c   : > { %440 = vmatprep.subr.bf16.mxu0 %v726_v21  ;;  %v342_v36 = vsub.s32 0, %v341_v35  ;;  %v338_v37 = vld [vmem:[%s315_s11] sm:$0x3]  ;;  %v346_v38 = vsub.s32 1, %v341_v35  ;;  %s509_s24 = scalar_lea.vmem (%p841_p6), %s910_s3, %s678_s12 }
  0x2e   : > { %v343_v39 = vrot.slane %v338_v37, %v342_v36  ;;  %v347_v40 = vrot.slane %v338_v37, %v346_v38 }
  0x2f   : > { %441 = vmatpush1.bf16.msra.mxu0 %v728_v22 }
  0x30   : > { %442 = vmatprep.subr.bf16.mxu0 %v729_v23 }
  0x33   : > { %443 = vmatpush1.bf16.msra.mxu0 %v731_v24 }
  0x34   : > { %444 = vmatprep.subr.bf16.mxu0 %v732_v25 }
  0x37   : > { %445 = vmatpush1.bf16.msra.mxu0 %v734_v26 }
  0x38   : > { %446 = vmatprep.subr.bf16.mxu0 %v735_v27 }
  0x3b   : > { %447 = vmatpush1.bf16.msra.mxu0 %v737_v28 }
  0x3c   : > { %448 = vmatprep.subr.bf16.mxu0 %v738_v29 }
  0x3f   : > { %449 = vmatpush1.bf16.msra.mxu0 %v740_v30 }
  0x40   : > { %450 = vmatprep.subr.bf16.mxu0 %v741_v31 }
  0x43   : > { %451 = vmatpush1.bf16.msra.mxu0 %v743_v32 }
  0x46   : > { %469 = vmatmul.mubr.bf16.vlgmr.msra.gmra.mxu0 %v744_v33 }
 0x106   : > { %v470_v41 = vpop.f32.mrf.mxu0 }
 0x107   : > { %v471_v42 = vadd.f32 %v470_v41, %v343_v39 }
 0x108   : > { %v472_v43 = vpop.f32.mrf.mxu0 }
 0x109   : > { %v473_v44 = vadd.f32 %v472_v43, %v347_v40  ;;  %v479_v46 = vmax.f32 %v471_v42, 0.0 }
 0x10a   : > { %v474_v45 = vpop.f32.mrf.mxu0 }
 0x10b   : > { %v480_v47 = vmax.f32 %v473_v44, 0.0  ;;  %v475_v48 = vadd.f32 %v474_v45, %v343_v39 }
 0x10c   : > { %v476_v49 = vpop.f32.mrf.mxu0 }
 0x10d   : > { %v676_v50 = vpack.c.bf16 %v480_v47, %v479_v46  ;;  %v477_v51 = vadd.f32 %v476_v49, %v347_v40  ;;  %v481_v52 = vmax.f32 %v475_v48, 0.0 }
 0x10f   : > { %495 = vst [vmem:[%s304_s19] sm:$0xff] %v676_v50  ;;  %v482_v53 = vmax.f32 %v477_v51, 0.0  ;;  %503 = sbr.rel (!%p841_p6) target bundleno = 284 (0x11c), region = 74 }
 0x111   : > { %v677_v54 = vpack.c.bf16 %v482_v53, %v481_v52 }
 0x113   : > { %496 = vst [vmem:[%s304_s19 + $0x8] sm:$0xff] %v677_v54 }
 0x116   : > { %v540_v55 = vld [vmem:[%s304_s19] sm:$0xff] }
 0x117   : > { %541 = vst [vmem:[%s509_s24] sm:$0xff] %v540_v55 }
 0x11a   : > { %v542_v56 = vld [vmem:[%s304_s19 + $0x8] sm:$0xff] }
 0x11b   : > { %543 = vst [vmem:[%s509_s24 + $0x10] sm:$0xff] %v542_v56 }
 0x11c PF: > { %s13_s16 = sadd.s32 1, %s783_s16   ;;  %s912_s12 = smov %s771_s13 }
 0x11d   : > { %p10_p12 = scmp.ge.s32.totalorder %s13_s16, 4   ;;  %s913_s13 = smov %s846_s22 }
 0x11e   : > { %s914_s14 = smov %s779_s15  ;;  %s915_s15 = smov %s917_s17 }
 0x11f   :  { %12 = sbr.rel (!%p10_p12) target bundleno = 3 (0x3), region = 149 }

// kernel: decoder_forward.27
= control target key start
LH: loop header
LB: loop body
LE: loop exit
PB: predicated region body
PF: predicated region fallthrough
CT: control target
= control target key end

     0   :  { %s733_s1 = inlined_call_operand.vmem [shape: bf16[512,128], index: 1, kind: input, shape index: {}]   ;;  %s734_s0 = inlined_call_operand.vmem [shape: bf16[16,512], index: 0, kind: input, shape index: {}]   ;;  %s735_s2 = inlined_call_operand.vmem [shape: f32[1,128], index: 2, kind: input, shape index: {}]   ;;  %s736_s3 = inlined_call_operand.vmem [shape: f32[16,128], index: 3, kind: input, shape index: {}]   ;;  %s737_s4 = inlined_call_operand.vmem [shape: f32[1,128], index: 4, kind: input, shape index: {}]   ;;  %s738_s5 = inlined_call_operand.vmem [shape: f32[1,128], index: 5, kind: input, shape index: {}]   ;;  %s739_s6 = inlined_call_operand.vmem [shape: f32[16,128], index: 6, kind: output, shape index: {}]  }
   0x1   :  { %v527_v0 = vld [vmem:[%s733_s1 + $0x78] sm:$0xff]   ;;  %v531_v4 = vld [vmem:[%s733_s1 + $0x70] sm:$0xff]   ;;  %v535_v8 = vld [vmem:[%s733_s1 + $0x68] sm:$0xff]  }
   0x2   :  { %v528_v1 = vld [vmem:[%s733_s1 + $0xf8] sm:$0xff]   ;;  %483 = vmatprep.subr.bf16.mxu0 %v527_v0  ;;  %v532_v5 = vld [vmem:[%s733_s1 + $0xf0] sm:$0xff]   ;;  %v536_v9 = vld [vmem:[%s733_s1 + $0xe8] sm:$0xff]  }
   0x3   :  { %v529_v2 = vld [vmem:[%s733_s1 + $0x38] sm:$0xff]   ;;  %505 = vmatprep.subr.bf16.mxu1 %v528_v1  ;;  %v533_v6 = vld [vmem:[%s733_s1 + $0x30] sm:$0xff]   ;;  %v537_v10 = vld [vmem:[%s733_s1 + $0x28] sm:$0xff]  }
   0x4   :  { %v530_v3 = vld [vmem:[%s733_s1 + $0xb8] sm:$0xff]   ;;  %484 = vmatpush3.bf16.msra.mxu0 %v529_v2  ;;  %v534_v7 = vld [vmem:[%s733_s1 + $0xb0] sm:$0xff]   ;;  %v538_v11 = vld [vmem:[%s733_s1 + $0xa8] sm:$0xff]  }
   0x5   :  { %506 = vmatpush3.bf16.msra.mxu1 %v530_v3  ;;  %485 = vmatprep.subr.bf16.mxu0 %v531_v4  ;;  %v539_v12 = vld [vmem:[%s733_s1 + $0x60] sm:$0xff]   ;;  %v543_v16 = vld [vmem:[%s733_s1 + $0x58] sm:$0xff]   ;;  %v547_v20 = vld [vmem:[%s733_s1 + $0x50] sm:$0xff]  }
   0x6   :  { %507 = vmatprep.subr.bf16.mxu1 %v532_v5  ;;  %v540_v13 = vld [vmem:[%s733_s1 + $0xe0] sm:$0xff]   ;;  %v544_v17 = vld [vmem:[%s733_s1 + $0xd8] sm:$0xff]   ;;  %v548_v21 = vld [vmem:[%s733_s1 + $0xd0] sm:$0xff]  }
   0x7   :  { %v541_v14 = vld [vmem:[%s733_s1 + $0x20] sm:$0xff]   ;;  %v545_v18 = vld [vmem:[%s733_s1 + $0x18] sm:$0xff]   ;;  %v549_v22 = vld [vmem:[%s733_s1 + $0x10] sm:$0xff]  }
   0x8   :  { %486 = vmatpush3.bf16.msra.mxu0 %v533_v6  ;;  %v542_v15 = vld [vmem:[%s733_s1 + $0xa0] sm:$0xff]   ;;  %v546_v19 = vld [vmem:[%s733_s1 + $0x98] sm:$0xff]   ;;  %v550_v23 = vld [vmem:[%s733_s1 + $0x90] sm:$0xff]  }
   0x9   :  { %508 = vmatpush3.bf16.msra.mxu1 %v534_v7  ;;  %487 = vmatprep.subr.bf16.mxu0 %v535_v8  ;;  %v551_v24 = vld [vmem:[%s733_s1 + $0x48] sm:$0xff]   ;;  %v555_v28 = vld [vmem:[%s733_s1 + $0x40] sm:$0xff]  }
   0xa   :  { %509 = vmatprep.subr.bf16.mxu1 %v536_v9  ;;  %v552_v25 = vld [vmem:[%s733_s1 + $0xc8] sm:$0xff]   ;;  %v556_v29 = vld [vmem:[%s733_s1 + $0xc0] sm:$0xff]  }
   0xb   :  { %v553_v26 = vld [vmem:[%s733_s1 + $0x8] sm:$0xff]   ;;  %v557_v30 = vld [vmem:[%s733_s1] sm:$0xff]  }
   0xc   :  { %488 = vmatpush3.bf16.msra.mxu0 %v537_v10  ;;  %v554_v27 = vld [vmem:[%s733_s1 + $0x88] sm:$0xff]   ;;  %v558_v31 = vld [vmem:[%s733_s1 + $0x80] sm:$0xff]  }
   0xd   :  { %510 = vmatpush3.bf16.msra.mxu1 %v538_v11  ;;  %489 = vmatprep.subr.bf16.mxu0 %v539_v12  ;;  %v559_v32 = vld [vmem:[%s734_s0] ss:$16 sps:$4 sm:$0xff]   ;;  %v561_v33 = vld [vmem:[%s734_s0 + $0x4] ss:$16 sps:$4 sm:$0xff]   ;;  %v562_v34 = vld [vmem:[%s734_s0 + $0x8] ss:$16 sps:$4 sm:$0xff]  }
   0xe   :  { %511 = vmatprep.subr.bf16.mxu1 %v540_v13  ;;  %v564_v35 = vld [vmem:[%s734_s0 + $0xc] ss:$16 sps:$4 sm:$0xff]   ;;  %343 = vmatprep.mubr.bf16.mxu0 %v561_v33  ;;  %v444_v38 = vld [vmem:[%s735_s2] ss:$0 sm:$0xff] }
   0xf   :  { %384 = vmatprep.mubr.bf16.mxu1 %v564_v35  ;;  %v393_v47 = vld [vmem:[%s736_s3] sm:$0xff]  ;;  %v394_v54 = vld [vmem:[%s736_s3 + $0x8] sm:$0xff] }
  0x10   :  { %490 = vmatpush3.bf16.msra.mxu0 %v541_v14  ;;  %v481_v8 = vld [vmem:[%s737_s4] ss:$0 sm:$0xff] }
  0x11   :  { %512 = vmatpush3.bf16.msra.mxu1 %v542_v15  ;;  %491 = vmatprep.subr.bf16.mxu0 %v543_v16  ;;  %v482_v10 = vld [vmem:[%s738_s5] ss:$0 sm:$0xff] }
  0x12   :  { %513 = vmatprep.subr.bf16.mxu1 %v544_v17 }
  0x14   :  { %492 = vmatpush3.bf16.msra.mxu0 %v545_v18 }
  0x15   :  { %514 = vmatpush3.bf16.msra.mxu1 %v546_v19  ;;  %493 = vmatprep.subr.bf16.mxu0 %v547_v20 }
  0x16   :  { %515 = vmatprep.subr.bf16.mxu1 %v548_v21 }
  0x18   :  { %494 = vmatpush3.bf16.msra.mxu0 %v549_v22 }
  0x19   :  { %516 = vmatpush3.bf16.msra.mxu1 %v550_v23  ;;  %495 = vmatprep.subr.bf16.mxu0 %v551_v24 }
  0x1a   :  { %517 = vmatprep.subr.bf16.mxu1 %v552_v25 }
  0x1c   :  { %496 = vmatpush3.bf16.msra.mxu0 %v553_v26 }
  0x1d   :  { %518 = vmatpush3.bf16.msra.mxu1 %v554_v27  ;;  %497 = vmatprep.subr.bf16.mxu0 %v555_v28 }
  0x1e   :  { %519 = vmatprep.subr.bf16.mxu1 %v556_v29 }
  0x20   :  { %498 = vmatpush3.bf16.msra.mxu0 %v557_v30 }
  0x21   :  { %520 = vmatpush3.bf16.msra.mxu1 %v558_v31 }
  0x23   :  { %344 = vmatmul.mubr.bf16.vlgmr.msra.gmra.mxu0 %v559_v32 }
  0x24   :  { %385 = vmatmul.mubr.bf16.vlgmr.msra.gmra.mxu1 %v562_v34 }
  0xe3   :  { %v499_v36 = vpop.f32.mrf.mxu0 }
  0xe4   :  { %v521_v37 = vpop.f32.mrf.mxu1 }
  0xe5   :  { %v500_v39 = vpop.f32.mrf.mxu0 }
  0xe6   :  { %v501_v40 = vadd.f32 %v500_v39, %v499_v36  ;;  %v522_v41 = vpop.f32.mrf.mxu1 }
  0xe7   :  { %v502_v42 = vpop.f32.mrf.mxu0  ;;  %v523_v44 = vadd.f32 %v522_v41, %v521_v37 }
  0xe8   :  { %v346_v43 = vadd.f32 %v501_v40, %v444_v38  ;;  %v524_v45 = vpop.f32.mrf.mxu1 }
  0xe9   :  { %v503_v46 = vpop.f32.mrf.mxu0 }
  0xea   :  { %v387_v48 = vadd.f32 %v523_v44, %v346_v43  ;;  %v504_v49 = vadd.f32 %v503_v46, %v502_v42  ;;  %v525_v50 = vpop.f32.mrf.mxu1 }
  0xeb   :  { %v526_v52 = vadd.f32 %v525_v50, %v524_v45 }
  0xec   :  { %v349_v51 = vadd.f32 %v504_v49, %v444_v38  ;;  %v395_v53 = vadd.f32 %v393_v47, %v387_v48 }
  0xee   :  { %v390_v55 = vadd.f32 %v526_v52, %v349_v51  ;;  %397 = vadd.xlane.f32.xlu0 %v395_v53 }
  0xf0   :  { %v396_v56 = vadd.f32 %v394_v54, %v390_v55 }
  0xf2   :  { %399 = vadd.xlane.f32.xlu0 %v396_v56 }
 0x177   :  { %v398_v57 = vpop.xlane.xlu0 %397 }
 0x178   :  { %v402_v58 = vmul.f32 0.0078125, %v398_v57 }
 0x17a   :  { %v404_v59 = vsub.f32 %v395_v53, %v402_v58 }
 0x17b   :  { %v400_v60 = vpop.xlane.xlu0 %399 }
 0x17c   :  { %v403_v61 = vmul.f32 0.0078125, %v400_v60  ;;  %v406_v62 = vmul.f32 %v404_v59, %v404_v59 }
 0x17e   :  { %v405_v63 = vsub.f32 %v396_v56, %v403_v61  ;;  %408 = vadd.xlane.f32.xlu1 %v406_v62 }
 0x180   :  { %v407_v0 = vmul.f32 %v405_v63, %v405_v63 }
 0x182   :  { %410 = vadd.xlane.f32.xlu1 %v407_v0 }
 0x207   :  { %v409_v1 = vpop.xlane.xlu1 %408 }
 0x208   :  { %v412_v2 = vmul.f32 0.0078125, %v409_v1 }
 0x20a   :  { %v414_v3 = vadd.f32 1e-05, %v412_v2 }
 0x20b   :  { %v411_v4 = vpop.xlane.xlu1 %410 }
 0x20c   :  { %565 = vrsqrt.f32 %v414_v3  ;;  %v413_v5 = vmul.f32 0.0078125, %v411_v4 }
 0x20e   :  { %v415_v6 = vadd.f32 1e-05, %v413_v5 }
 0x210   :  { %567 = vrsqrt.f32 %v415_v6 }
 0x219   :  { %v566_v7 = vpop.eup %565 }
 0x21a   :  { %v418_v9 = vmul.f32 %v566_v7, %v404_v59 }
 0x21c   :  { %v427_v11 = vmul.f32 %v481_v8, %v418_v9 }
 0x21d   :  { %v568_v12 = vpop.eup %567 }
 0x21e   :  { %v436_v13 = vadd.f32 %v482_v10, %v427_v11  ;;  %v419_v14 = vmul.f32 %v568_v12, %v405_v63 }
 0x220   :  { %438 = vst [vmem:[%s739_s6] sm:$0xff] %v436_v13  ;;  %v428_v15 = vmul.f32 %v481_v8, %v419_v14 }
 0x222   :  { %v437_v16 = vadd.f32 %v482_v10, %v428_v15 }
 0x224   :  { %439 = vst [vmem:[%s739_s6 + $0x8] sm:$0xff] %v437_v16 }

// kernel: decoder_forward.37
= control target key start
LH: loop header
LB: loop body
LE: loop exit
PB: predicated region body
PF: predicated region fallthrough
CT: control target
= control target key end

     0   :  { %v191_v0 = vmov 0.0   ;;  %vm192_vm0 = vmmov 0   ;;  %s249_s1 = inlined_call_operand.vmem [shape: bf16[128,128], index: 1, kind: input, shape index: {}]   ;;  %s250_s0 = inlined_call_operand.vmem [shape: bf16[16,128], index: 0, kind: input, shape index: {}]   ;;  %s251_s2 = inlined_call_operand.vmem [shape: f32[1,128], index: 2, kind: input, shape index: {}]   ;;  %s252_s3 = inlined_call_operand.vmem [shape: f32[16,128], index: 3, kind: output, shape index: {}]  }
   0x1   :  { %160 = vmatprep.subr.bf16.mxu0 %v191_v0  ;;  %v182_v1 = vld [vmem:[%s249_s1 + $0x38] sm:$0xff]   ;;  %176 = vmatprep.mubr.msk.bf16.mxu0 %vm192_vm0, %v191_v0  ;;  %v183_v2 = vld [vmem:[%s249_s1 + $0x30] sm:$0xff]   ;;  %v184_v3 = vld [vmem:[%s249_s1 + $0x28] sm:$0xff]  }
   0x2   :  { %161 = vmatpush3.bf16.msra.mxu0 %v182_v1  ;;  %v185_v4 = vld [vmem:[%s249_s1 + $0x20] sm:$0xff]   ;;  %v186_v5 = vld [vmem:[%s249_s1 + $0x18] sm:$0xff]   ;;  %v187_v6 = vld [vmem:[%s249_s1 + $0x10] sm:$0xff]  }
   0x3   :  { %162 = vmatprep.subr.bf16.mxu0 %v191_v0  ;;  %v188_v7 = vld [vmem:[%s249_s1 + $0x8] sm:$0xff]   ;;  %v189_v8 = vld [vmem:[%s249_s1] sm:$0xff]  }
   0x4   :  { %v190_v9 = vld [vmem:[%s250_s0] sm:$0xff]  }
   0x5   :  { %v141_v10 = vld [vmem:[%s251_s2] ss:$0 sm:$0xff] }
   0x6   :  { %163 = vmatpush3.bf16.msra.mxu0 %v183_v2 }
   0x7   :  { %164 = vmatprep.subr.bf16.mxu0 %v191_v0 }
   0xa   :  { %165 = vmatpush3.bf16.msra.mxu0 %v184_v3 }
   0xb   :  { %166 = vmatprep.subr.bf16.mxu0 %v191_v0 }
   0xe   :  { %167 = vmatpush3.bf16.msra.mxu0 %v185_v4 }
   0xf   :  { %168 = vmatprep.subr.bf16.mxu0 %v191_v0 }
  0x12   :  { %169 = vmatpush3.bf16.msra.mxu0 %v186_v5 }
  0x13   :  { %170 = vmatprep.subr.bf16.mxu0 %v191_v0 }
  0x16   :  { %171 = vmatpush3.bf16.msra.mxu0 %v187_v6 }
  0x17   :  { %172 = vmatprep.subr.bf16.mxu0 %v191_v0 }
  0x1a   :  { %173 = vmatpush3.bf16.msra.mxu0 %v188_v7 }
  0x1b   :  { %174 = vmatprep.subr.bf16.mxu0 %v191_v0 }
  0x1e   :  { %175 = vmatpush3.bf16.msra.mxu0 %v189_v8 }
  0x21   :  { %177 = vmatmul.mubr.bf16.vlgmr.msra.gmra.mxu0 %v190_v9 }
  0xe1   :  { %v128_v11 = vpop.f32.mrf.mxu0 }
  0xe2   :  { %v129_v12 = vadd.f32 %v141_v10, %v128_v11 }
  0xe3   :  { %v178_v13 = vpop.f32.mrf.mxu0 }
  0xe4   :  { %135 = vst [vmem:[%s252_s3] sm:$0xff] %v129_v12 }
  0xe5   :  { %v131_v14 = vpop.f32.mrf.mxu0 }
  0xe6   :  { %v132_v15 = vadd.f32 %v141_v10, %v131_v14 }
  0xe7   :  { %v179_v16 = vpop.f32.mrf.mxu0 }
  0xe8   :  { %136 = vst [vmem:[%s252_s3 + $0x8] sm:$0xff] %v132_v15 }

// kernel: decoder_forward.24
= control target key start
LH: loop header
LB: loop body
LE: loop exit
PB: predicated region body
PF: predicated region fallthrough
CT: control target
= control target key end

     0   :  { %s1534_s12 = smov 0   ;;  %s1717_s0 = inlined_call_operand.vmem [shape: bf16[16,8,16], index: 0, kind: input, shape index: {}]   ;;  %s1718_s1 = inlined_call_operand.vmem [shape: bf16[16,16,16], index: 1, kind: input, shape index: {}]   ;;  %s1719_s2 = inlined_call_operand.vmem [shape: bf16[16,16,16], index: 2, kind: input, shape index: {}]   ;;  %s1720_s3 = inlined_call_operand.vmem [shape: bf16[16,8,16], index: 3, kind: output, shape index: {}]  }
   0x1 LB: > { %s1267_s13 = sadd.s32 4294967295, %s1510_s12   ;;  %p1271_p0 = scmp.ge.s32.totalorder %s1510_s12, 1  ;;  %s1510_s12 = sphi %s1534_s12, %s13_s12  }
   0x2   : > { %p162_p1 = scmp.lt.s32.totalorder %s1510_s12, 3 }
   0x4   : > { %p163_p2 = pnand %p1271_p0, %p162_p1 }
   0x5   : > { %s1272_s14 = sshll.u32 (!%p163_p2), %s1267_s13, 3 }
   0x6   : > { %166 = sbr.rel (%p163_p2) target bundleno = 759 (0x2f7), region = 32  ;;  %p199_p3 = scmp.lt.s32.totalorder (!%p163_p2), %s1272_s14, 15 }
   0xb   : > { %v1512_v0 = vmov 0.0   ;;  %vm1513_vm0 = vmmov 0   ;;  %s1722_s14 = smov (!%p199_p3, %s1272_s14), 15  ;;  %vm270_vm1 = vcmask 130048   ;;  %vm1178_vm2 = vcmask 125952  }
   0xc   : > { %1350 = vmatprep.subr.bf16.mxu0 %v1512_v0  ;;  %1356 = vmatprep.subr.bf16.mxu1 %v1512_v0  ;;  %s1316_s15 = sshll.u32 %s1722_s14, 3  ;;  %s1273_s19 = sshll.u32 %s1722_s14, 2 }
   0xd   : > { %1352 = vmatprep.mubr.msk.bf16.mxu0 %vm1513_vm0, %v1512_v0  ;;  %1358 = vmatprep.mubr.msk.bf16.mxu1 %vm1513_vm0, %v1512_v0  ;;  %s1554_s18 = scalar_lea.vmem %s1718_s1, %s1316_s15  ;;  %s1566_s22 = scalar_lea.vmem %s1717_s0, %s1273_s19 }
   0xe   : > { %v1456_v1 = vld [vmem:[%s1554_s18] sm:$0xff]   ;;  %v1457_v2 = vld [vmem:[%s1554_s18 + $0x8] sm:$0xff]   ;;  %v1458_v5 = vld [vmem:[%s1554_s18 + $0x10] sm:$0xff]   ;;  %s1579_s25 = scalar_lea.vmem %s1719_s2, %s1316_s15  ;;  %s1696_s28 = scalar_lea.vmem %s1720_s3, %s1273_s19 }
   0xf   : > { %v275_v3 = vsel %vm270_vm1, %v1456_v1, 0  ;;  %v326_v4 = vsel %vm270_vm1, %v1457_v2, 0  ;;  %v1459_v6 = vld [vmem:[%s1554_s18 + $0x18] sm:$0xff]   ;;  %v225_v7 = vld [vmem:[%s1566_s22] sm:$0xf]  ;;  %v377_v9 = vsel %vm270_vm1, %v1458_v5, 0 }
  0x10   : > { %1351 = vmatpush3.bf16.xpose.msra.mxu0 %v275_v3  ;;  %1357 = vmatpush3.bf16.xpose.msra.mxu1 %v326_v4  ;;  %v226_v8 = vld [vmem:[%s1566_s22 + $0x4] sm:$0xf]  ;;  %v428_v10 = vsel %vm270_vm1, %v1459_v6, 0  ;;  %v1461_v12 = vld [vmem:[%s1554_s18 + $0x28] sm:$0xff]   ;;  %v1462_v17 = vld [vmem:[%s1554_s18 + $0x30] sm:$0xff]  }
  0x11   : > { %1362 = vmatprep.subr.bf16.mxu0 %v1512_v0  ;;  %1368 = vmatprep.subr.bf16.mxu1 %v1512_v0  ;;  %v1460_v11 = vld [vmem:[%s1554_s18 + $0x20] sm:$0xff]   ;;  %v227_v13 = vld [vmem:[%s1566_s22 + $0x8] sm:$0xf]  ;;  %v228_v14 = vld [vmem:[%s1566_s22 + $0xc] sm:$0xf]  ;;  %v530_v16 = vsel %vm270_vm1, %v1461_v12, 0 }
  0x12   : > { %v479_v15 = vsel %vm270_vm1, %v1460_v11, 0  ;;  %v1463_v18 = vld [vmem:[%s1554_s18 + $0x38] sm:$0xff]   ;;  %v229_v19 = vld [vmem:[%s1566_s22 + $0x10] sm:$0xf]  ;;  %v230_v20 = vld [vmem:[%s1566_s22 + $0x14] sm:$0xf] }
  0x13   : > { %v581_v21 = vsel %vm270_vm1, %v1462_v17, 0  ;;  %v632_v22 = vsel %vm270_vm1, %v1463_v18, 0  ;;  %v231_v23 = vld [vmem:[%s1566_s22 + $0x18] sm:$0xf]  ;;  %v232_v24 = vld [vmem:[%s1566_s22 + $0x1c] sm:$0xf] }
  0x17   : > { %1353 = vmatmul.mubr.msk.bf16.vlgmr.msra.gmra.mxu0 %vm270_vm1, %v225_v7  ;;  %1359 = vmatmul.mubr.msk.bf16.vlgmr.msra.gmra.mxu1 %vm270_vm1, %v226_v8 }
  0x18   : > { %1363 = vmatpush3.bf16.xpose.msra.mxu0 %v377_v9  ;;  %1369 = vmatpush3.bf16.xpose.msra.mxu1 %v428_v10 }
  0x19   : > { %1364 = vmatprep.mubr.msk.bf16.mxu0 %vm1513_vm0, %v1512_v0  ;;  %1370 = vmatprep.mubr.msk.bf16.mxu1 %vm1513_vm0, %v1512_v0 }
  0x1a   : > { %1374 = vmatprep.subr.bf16.mxu0 %v1512_v0  ;;  %1380 = vmatprep.subr.bf16.mxu1 %v1512_v0 }
  0x1f   : > { %1365 = vmatmul.mubr.msk.bf16.vlgmr.msra.gmra.mxu0 %vm270_vm1, %v227_v13  ;;  %1371 = vmatmul.mubr.msk.bf16.vlgmr.msra.gmra.mxu1 %vm270_vm1, %v228_v14 }
  0x20   : > { %1375 = vmatpush3.bf16.xpose.msra.mxu0 %v479_v15  ;;  %1381 = vmatpush3.bf16.xpose.msra.mxu1 %v530_v16 }
  0x21   : > { %1376 = vmatprep.mubr.msk.bf16.mxu0 %vm1513_vm0, %v1512_v0  ;;  %1382 = vmatprep.mubr.msk.bf16.mxu1 %vm1513_vm0, %v1512_v0 }
  0x22   : > { %1386 = vmatprep.subr.bf16.mxu0 %v1512_v0  ;;  %1392 = vmatprep.subr.bf16.mxu1 %v1512_v0 }
  0x27   : > { %1377 = vmatmul.mubr.msk.bf16.vlgmr.msra.gmra.mxu0 %vm270_vm1, %v229_v19  ;;  %1383 = vmatmul.mubr.msk.bf16.vlgmr.msra.gmra.mxu1 %vm270_vm1, %v230_v20 }
  0x28   : > { %1387 = vmatpush3.bf16.xpose.msra.mxu0 %v581_v21  ;;  %1393 = vmatpush3.bf16.xpose.msra.mxu1 %v632_v22 }
  0x29   : > { %1388 = vmatprep.mubr.msk.bf16.mxu0 %vm1513_vm0, %v1512_v0  ;;  %1394 = vmatprep.mubr.msk.bf16.mxu1 %vm1513_vm0, %v1512_v0 }
  0x2a   : > { %1398 = vmatprep.subr.bf16.mxu0 %v1512_v0  ;;  %1404 = vmatprep.subr.bf16.mxu1 %v1512_v0 }
  0x2f   : > { %1389 = vmatmul.mubr.msk.bf16.vlgmr.msra.gmra.mxu0 %vm270_vm1, %v231_v23  ;;  %1395 = vmatmul.mubr.msk.bf16.vlgmr.msra.gmra.mxu1 %vm270_vm1, %v232_v24 }
  0x30   : > { %1400 = vmatprep.mubr.msk.bf16.mxu0 %vm1513_vm0, %v1512_v0  ;;  %1406 = vmatprep.mubr.msk.bf16.mxu1 %vm1513_vm0, %v1512_v0 }
  0xd7   : > { %v311_v25 = vpop.f32.mrf.mxu0  ;;  %v362_v27 = vpop.f32.mrf.mxu1 }
  0xd8   : > { %v674_v26 = vmul.f32 0.25, %v311_v25  ;;  %v675_v28 = vmul.f32 0.25, %v362_v27 }
  0xd9   : > { %v1354_v29 = vpop.f32.mrf.mxu0  ;;  %v1360_v30 = vpop.f32.mrf.mxu1 }
  0xda   : > { %v682_v31 = vsel %vm270_vm1, %v674_v26, -inf  ;;  %v685_v34 = vsel %vm270_vm1, %v675_v28, -inf }
  0xdb   : > { %683 = vmax.xlane.f32.xlu0 %v682_v31  ;;  %v314_v32 = vpop.f32.mrf.mxu0  ;;  %v365_v33 = vpop.f32.mrf.mxu1 }
  0xdd   : > { %v1355_v35 = vpop.f32.mrf.mxu0  ;;  %v1361_v36 = vpop.f32.mrf.mxu1 }
  0xdf   : > { %686 = vmax.xlane.f32.xlu0 %v685_v34  ;;  %v413_v37 = vpop.f32.mrf.mxu0  ;;  %v464_v38 = vpop.f32.mrf.mxu1 }
  0xe0   : > { %v676_v39 = vmul.f32 0.25, %v413_v37  ;;  %v677_v40 = vmul.f32 0.25, %v464_v38 }
  0xe1   : > { %v1366_v41 = vpop.f32.mrf.mxu0  ;;  %v1372_v42 = vpop.f32.mrf.mxu1 }
  0xe2   : > { %v688_v43 = vsel %vm270_vm1, %v676_v39, -inf  ;;  %v691_v46 = vsel %vm270_vm1, %v677_v40, -inf }
  0xe3   : > { %689 = vmax.xlane.f32.xlu1 %v688_v43  ;;  %v416_v44 = vpop.f32.mrf.mxu0  ;;  %v467_v45 = vpop.f32.mrf.mxu1 }
  0xe5   : > { %v1367_v47 = vpop.f32.mrf.mxu0  ;;  %v1373_v48 = vpop.f32.mrf.mxu1 }
  0xe6   : > { %v1464_v47 = vld [vmem:[%s1579_s25] sm:$0xff]   ;;  %v1465_v48 = vld [vmem:[%s1579_s25 + $0x8] sm:$0xff]  }
  0xe7   : > { %692 = vmax.xlane.f32.xlu1 %v691_v46  ;;  %v515_v49 = vpop.f32.mrf.mxu0  ;;  %v566_v50 = vpop.f32.mrf.mxu1  ;;  %1399 = vmatpush3.bf16.msra.mxu0 %v1464_v47 }
  0xe8   : > { %v678_v51 = vmul.f32 0.25, %v515_v49  ;;  %v679_v52 = vmul.f32 0.25, %v566_v50  ;;  %1405 = vmatpush3.bf16.msra.mxu1 %v1465_v48  ;;  %1410 = vmatprep.subr.bf16.mxu0 %v1512_v0 }
  0xe9   : > { %v1378_v53 = vpop.f32.mrf.mxu0  ;;  %v1384_v54 = vpop.f32.mrf.mxu1  ;;  %1416 = vmatprep.subr.bf16.mxu1 %v1512_v0 }
  0xea   : > { %v694_v55 = vsel %vm270_vm1, %v678_v51, -inf  ;;  %v697_v56 = vsel %vm270_vm1, %v679_v52, -inf }
  0xeb   : > { %695 = vmax.xlane.f32.xlu0 %v694_v55  ;;  %v518_v57 = vpop.f32.mrf.mxu0  ;;  %v569_v58 = vpop.f32.mrf.mxu1  ;;  %698 = vmax.xlane.f32.xlu1 %v697_v56 }
  0xed   : > { %v1379_v59 = vpop.f32.mrf.mxu0  ;;  %v1385_v60 = vpop.f32.mrf.mxu1 }
  0xee   : > { %v1467_v59 = vld [vmem:[%s1579_s25 + $0x10] sm:$0xff]  }
  0xef   : > { %v617_v61 = vpop.f32.mrf.mxu0  ;;  %v668_v63 = vpop.f32.mrf.mxu1 }
  0xf0   : > { %v680_v62 = vmul.f32 0.25, %v617_v61  ;;  %v681_v1 = vmul.f32 0.25, %v668_v63 }
  0xf1   : > { %v1390_v2 = vpop.f32.mrf.mxu0  ;;  %v1396_v3 = vpop.f32.mrf.mxu1 }
  0xf2   : > { %v700_v4 = vsel %vm270_vm1, %v680_v62, -inf  ;;  %v703_v5 = vsel %vm270_vm1, %v681_v1, -inf }
  0xf3   : > { %701 = vmax.xlane.f32.xlu0 %v700_v4  ;;  %v620_v6 = vpop.f32.mrf.mxu0  ;;  %v671_v7 = vpop.f32.mrf.mxu1  ;;  %704 = vmax.xlane.f32.xlu1 %v703_v5 }
  0xf4   : > { %v1468_v6 = vld [vmem:[%s1579_s25 + $0x20] sm:$0xff]  }
  0xf5   : > { %v1391_v8 = vpop.f32.mrf.mxu0  ;;  %v1397_v9 = vpop.f32.mrf.mxu1 }
 0x164   : > { %v684_v10 = vpop.xlane.xlu0 %683 }
 0x165   : > { %v706_v11 = vsub.f32 %v674_v26, %v684_v10 }
 0x167   : > { %v714_v12 = vmul.f32 1.442695, %v706_v11  ;;  %v1469_v11 = vld [vmem:[%s1579_s25 + $0x28] sm:$0xff]  }
 0x168   : > { %v687_v13 = vpop.xlane.xlu0 %686 }
 0x169   : > { %1472 = vpow2.f32 %v714_v12  ;;  %v707_v14 = vsub.f32 %v675_v28, %v687_v13 }
 0x16b   : > { %v716_v15 = vmul.f32 1.442695, %v707_v14 }
 0x16c   : > { %v690_v16 = vpop.xlane.xlu1 %689 }
 0x16d   : > { %1474 = vpow2.f32 %v716_v15  ;;  %v708_v17 = vsub.f32 %v676_v39, %v690_v16  ;;  %v1470_v16 = vld [vmem:[%s1579_s25 + $0x30] sm:$0xff]  }
 0x16f   : > { %v718_v18 = vmul.f32 1.442695, %v708_v17 }
 0x170   : > { %v693_v19 = vpop.xlane.xlu1 %692 }
 0x171   : > { %1476 = vpow2.f32 %v718_v18  ;;  %v709_v20 = vsub.f32 %v677_v40, %v693_v19  ;;  %v1471_v19 = vld [vmem:[%s1579_s25 + $0x38] sm:$0xff]  }
 0x173   : > { %v720_v21 = vmul.f32 1.442695, %v709_v20 }
 0x174   : > { %v696_v22 = vpop.xlane.xlu0 %695  ;;  %v699_v23 = vpop.xlane.xlu1 %698 }
 0x175   : > { %1478 = vpow2.f32 %v720_v21  ;;  %v710_v24 = vsub.f32 %v678_v51, %v696_v22  ;;  %v711_v27 = vsub.f32 %v679_v52, %v699_v23 }
 0x176   : > { %v1473_v25 = vpop.eup %1472 }
 0x177   : > { %v722_v26 = vmul.f32 1.442695, %v710_v24  ;;  %v730_v29 = vsel %vm270_vm1, %v1473_v25, 0.0  ;;  %v724_v30 = vmul.f32 1.442695, %v711_v27 }
 0x178   : > { %731 = vadd.xlane.f32.xlu0 %v730_v29 }
 0x179   : > { %1480 = vpow2.f32 %v722_v26 }
 0x17a   : > { %v1475_v28 = vpop.eup %1474  ;;  %1482 = vpow2.f32 %v724_v30 }
 0x17b   : > { %v733_v31 = vsel %vm270_vm1, %v1475_v28, 0.0 }
 0x17c   : > { %734 = vadd.xlane.f32.xlu1 %v733_v31  ;;  %v702_v32 = vpop.xlane.xlu0 %701  ;;  %v705_v33 = vpop.xlane.xlu1 %704 }
 0x17d   : > { %v712_v34 = vsub.f32 %v680_v62, %v702_v32  ;;  %v713_v36 = vsub.f32 %v681_v1, %v705_v33  ;;  %v1466_v1 = vld [vmem:[%s1579_s25 + $0x18] sm:$0xff]  }
 0x17e   : > { %v1477_v35 = vpop.eup %1476 }
 0x17f   : > { %v726_v37 = vmul.f32 1.442695, %v712_v34  ;;  %v736_v38 = vsel %vm270_vm1, %v1477_v35, 0.0  ;;  %v728_v39 = vmul.f32 1.442695, %v713_v36 }
 0x180   : > { %737 = vadd.xlane.f32.xlu0 %v736_v38 }
 0x181   : > { %1484 = vpow2.f32 %v726_v37 }
 0x182   : > { %v1479_v40 = vpop.eup %1478  ;;  %1486 = vpow2.f32 %v728_v39 }
 0x183   : > { %v739_v41 = vsel %vm270_vm1, %v1479_v40, 0.0 }
 0x184   : > { %740 = vadd.xlane.f32.xlu1 %v739_v41 }
 0x186   : > { %v1637_v42 = vpop.eup %1480 }
 0x187   : > { %v1639_v43 = vpop.eup %1482  ;;  %v742_v44 = vsel %vm270_vm1, %v1637_v42, 0.0 }
 0x188   : > { %v745_v45 = vsel %vm270_vm1, %v1639_v43, 0.0  ;;  %743 = vadd.xlane.f32.xlu0 %v742_v44 }
 0x189   : > { %746 = vadd.xlane.f32.xlu1 %v745_v45 }
 0x18e   : > { %v1645_v46 = vpop.eup %1484 }
 0x18f   : > { %v1649_v49 = vpop.eup %1486  ;;  %v748_v50 = vsel %vm270_vm1, %v1645_v46, 0.0 }
 0x190   : > { %v751_v51 = vsel %vm270_vm1, %v1649_v49, 0.0  ;;  %749 = vadd.xlane.f32.xlu0 %v748_v50 }
 0x191   : > { %752 = vadd.xlane.f32.xlu1 %v751_v51 }
 0x201   : > { %v732_v52 = vpop.xlane.xlu0 %731 }
 0x202   : > { %1488 = vrcp.f32 %v732_v52 }
 0x205   : > { %v735_v53 = vpop.xlane.xlu1 %734 }
 0x206   : > { %1490 = vrcp.f32 %v735_v53 }
 0x209   : > { %v738_v54 = vpop.xlane.xlu0 %737 }
 0x20a   : > { %1492 = vrcp.f32 %v738_v54 }
 0x20d   : > { %v741_v55 = vpop.xlane.xlu1 %740 }
 0x20e   : > { %1494 = vrcp.f32 %v741_v55 }
 0x20f   : > { %v1489_v56 = vpop.eup %1488 }
 0x210   : > { %v762_v57 = vmul.f32 %v1489_v56, %v1473_v25 }
 0x211   : > { %v744_v58 = vpop.xlane.xlu0 %743 }
 0x212   : > { %v747_v60 = vpop.xlane.xlu1 %746  ;;  %1496 = vrcp.f32 %v744_v58  ;;  %v770_v61 = vpack.c.bf16 %v762_v57, %v762_v57 }
 0x213   : > { %v1491_v62 = vpop.eup %1490  ;;  %1498 = vrcp.f32 %v747_v60 }
 0x214   : > { %1401 = vmatmul.mubr.msk.bf16.vlgmr.msra.gmra.mxu0 %vm270_vm1, %v770_v61  ;;  %v763_v63 = vmul.f32 %v1491_v62, %v1475_v28 }
 0x215   : > { %1411 = vmatpush3.bf16.msra.mxu0 %v1467_v59  ;;  %1412 = vmatprep.mubr.msk.bf16.mxu0 %vm1513_vm0, %v1512_v0 }
 0x216   : > { %v771_v2 = vpack.c.bf16 %v763_v63, %v763_v63  ;;  %1422 = vmatprep.subr.bf16.mxu0 %v1512_v0 }
 0x217   : > { %v1493_v3 = vpop.eup %1492 }
 0x218   : > { %1407 = vmatmul.mubr.msk.bf16.vlgmr.msra.gmra.mxu1 %vm270_vm1, %v771_v2  ;;  %v764_v4 = vmul.f32 %v1493_v3, %v1477_v35 }
 0x219   : > { %1417 = vmatpush3.bf16.msra.mxu1 %v1466_v1  ;;  %v750_v5 = vpop.xlane.xlu0 %749  ;;  %1418 = vmatprep.mubr.msk.bf16.mxu1 %vm1513_vm0, %v1512_v0 }
 0x21a   : > { %v753_v7 = vpop.xlane.xlu1 %752  ;;  %1500 = vrcp.f32 %v750_v5  ;;  %v772_v8 = vpack.c.bf16 %v764_v4, %v764_v4  ;;  %1428 = vmatprep.subr.bf16.mxu1 %v1512_v0 }
 0x21b   : > { %v1495_v9 = vpop.eup %1494  ;;  %1502 = vrcp.f32 %v753_v7 }
 0x21c   : > { %1413 = vmatmul.mubr.msk.bf16.vlgmr.msra.gmra.mxu0 %vm270_vm1, %v772_v8  ;;  %v765_v10 = vmul.f32 %v1495_v9, %v1479_v40 }
 0x21d   : > { %1423 = vmatpush3.bf16.msra.mxu0 %v1468_v6  ;;  %1424 = vmatprep.mubr.msk.bf16.mxu0 %vm1513_vm0, %v1512_v0 }
 0x21e   : > { %v773_v12 = vpack.c.bf16 %v765_v10, %v765_v10  ;;  %1434 = vmatprep.subr.bf16.mxu0 %v1512_v0 }
 0x21f   : > { %v1497_v13 = vpop.eup %1496 }
 0x220   : > { %v1499_v14 = vpop.eup %1498  ;;  %1419 = vmatmul.mubr.msk.bf16.vlgmr.msra.gmra.mxu1 %vm270_vm1, %v773_v12  ;;  %v766_v15 = vmul.f32 %v1497_v13, %v1637_v42 }
 0x221   : > { %1429 = vmatpush3.bf16.msra.mxu1 %v1469_v11  ;;  %1430 = vmatprep.mubr.msk.bf16.mxu1 %vm1513_vm0, %v1512_v0  ;;  %v767_v18 = vmul.f32 %v1499_v14, %v1639_v43 }
 0x222   : > { %v774_v17 = vpack.c.bf16 %v766_v15, %v766_v15  ;;  %1440 = vmatprep.subr.bf16.mxu1 %v1512_v0 }
 0x223   : > { %v775_v20 = vpack.c.bf16 %v767_v18, %v767_v18 }
 0x224   : > { %1425 = vmatmul.mubr.msk.bf16.vlgmr.msra.gmra.mxu0 %vm270_vm1, %v774_v17 }
 0x225   : > { %1435 = vmatpush3.bf16.msra.mxu0 %v1470_v16  ;;  %1436 = vmatprep.mubr.msk.bf16.mxu0 %vm1513_vm0, %v1512_v0 }
 0x227   : > { %v1501_v21 = vpop.eup %1500 }
 0x228   : > { %v1503_v22 = vpop.eup %1502  ;;  %1431 = vmatmul.mubr.msk.bf16.vlgmr.msra.gmra.mxu1 %vm270_vm1, %v775_v20  ;;  %v768_v23 = vmul.f32 %v1501_v21, %v1645_v46 }
 0x229   : > { %1441 = vmatpush3.bf16.msra.mxu1 %v1471_v19  ;;  %1442 = vmatprep.mubr.msk.bf16.mxu1 %vm1513_vm0, %v1512_v0  ;;  %v769_v25 = vmul.f32 %v1503_v22, %v1649_v49 }
 0x22a   : > { %v776_v24 = vpack.c.bf16 %v768_v23, %v768_v23 }
 0x22b   : > { %v777_v27 = vpack.c.bf16 %v769_v25, %v769_v25 }
 0x22c   : > { %1437 = vmatmul.mubr.msk.bf16.vlgmr.msra.gmra.mxu0 %vm270_vm1, %v776_v24 }
 0x230   : > { %1443 = vmatmul.mubr.msk.bf16.vlgmr.msra.gmra.mxu1 %vm270_vm1, %v777_v27 }
 0x2d4   : > { %v821_v26 = vpop.f32.mrf.mxu0 }
 0x2d5   : > { %v1170_v0 = vpack.c.bf16 %v821_v26, %v821_v26 }
 0x2d6   : > { %v1402_v29 = vpop.f32.mrf.mxu0 }
 0x2d7   : > { %1179 = vst.msk [vmem:[%s1696_s28] sm:$0xf] %vm1178_vm2, %v1170_v0 }
 0x2d8   : > { %v824_v30 = vpop.f32.mrf.mxu0  ;;  %v870_v28 = vpop.f32.mrf.mxu1 }
 0x2d9   : > { %v1171_v31 = vpack.c.bf16 %v870_v28, %v870_v28 }
 0x2da   : > { %v1403_v32 = vpop.f32.mrf.mxu0  ;;  %v1408_v33 = vpop.f32.mrf.mxu1 }
 0x2db   : > { %1180 = vst.msk [vmem:[%s1696_s28 + $0x4] sm:$0xf] %vm1178_vm2, %v1171_v31 }
 0x2dc   : > { %v873_v34 = vpop.f32.mrf.mxu1  ;;  %v919_v35 = vpop.f32.mrf.mxu0 }
 0x2dd   : > { %v1172_v36 = vpack.c.bf16 %v919_v35, %v919_v35 }
 0x2de   : > { %v1409_v37 = vpop.f32.mrf.mxu1  ;;  %v1414_v38 = vpop.f32.mrf.mxu0 }
 0x2df   : > { %1181 = vst.msk [vmem:[%s1696_s28 + $0x8] sm:$0xf] %vm1178_vm2, %v1172_v36 }
 0x2e0   : > { %v922_v39 = vpop.f32.mrf.mxu0  ;;  %v968_v40 = vpop.f32.mrf.mxu1 }
 0x2e1   : > { %v1173_v41 = vpack.c.bf16 %v968_v40, %v968_v40 }
 0x2e2   : > { %v1415_v42 = vpop.f32.mrf.mxu0  ;;  %v1420_v43 = vpop.f32.mrf.mxu1 }
 0x2e3   : > { %1182 = vst.msk [vmem:[%s1696_s28 + $0xc] sm:$0xf] %vm1178_vm2, %v1173_v41 }
 0x2e4   : > { %v971_v44 = vpop.f32.mrf.mxu1  ;;  %v1017_v45 = vpop.f32.mrf.mxu0 }
 0x2e5   : > { %v1174_v46 = vpack.c.bf16 %v1017_v45, %v1017_v45 }
 0x2e6   : > { %v1421_v47 = vpop.f32.mrf.mxu1  ;;  %v1426_v48 = vpop.f32.mrf.mxu0 }
 0x2e7   : > { %1183 = vst.msk [vmem:[%s1696_s28 + $0x10] sm:$0xf] %vm1178_vm2, %v1174_v46 }
 0x2e8   : > { %v1020_v49 = vpop.f32.mrf.mxu0  ;;  %v1066_v50 = vpop.f32.mrf.mxu1 }
 0x2e9   : > { %v1175_v51 = vpack.c.bf16 %v1066_v50, %v1066_v50 }
 0x2ea   : > { %v1427_v52 = vpop.f32.mrf.mxu0  ;;  %v1432_v53 = vpop.f32.mrf.mxu1 }
 0x2eb   : > { %1184 = vst.msk [vmem:[%s1696_s28 + $0x14] sm:$0xf] %vm1178_vm2, %v1175_v51 }
 0x2ec   : > { %v1069_v54 = vpop.f32.mrf.mxu1  ;;  %v1115_v55 = vpop.f32.mrf.mxu0 }
 0x2ed   : > { %v1176_v56 = vpack.c.bf16 %v1115_v55, %v1115_v55 }
 0x2ee   : > { %v1433_v57 = vpop.f32.mrf.mxu1  ;;  %v1438_v58 = vpop.f32.mrf.mxu0 }
 0x2ef   : > { %1185 = vst.msk [vmem:[%s1696_s28 + $0x18] sm:$0xf] %vm1178_vm2, %v1176_v56 }
 0x2f0   : > { %v1118_v59 = vpop.f32.mrf.mxu0  ;;  %v1164_v60 = vpop.f32.mrf.mxu1 }
 0x2f1   : > { %v1177_v61 = vpack.c.bf16 %v1164_v60, %v1164_v60 }
 0x2f2   : > { %v1439_v62 = vpop.f32.mrf.mxu0  ;;  %v1444_v63 = vpop.f32.mrf.mxu1 }
 0x2f3   : > { %1186 = vst.msk [vmem:[%s1696_s28 + $0x1c] sm:$0xf] %vm1178_vm2, %v1177_v61 }
 0x2f4   : > { %v1167_v1 = vpop.f32.mrf.mxu1 }
 0x2f6   : > { %v1445_v2 = vpop.f32.mrf.mxu1 }
 0x2f7 PF: > { %s13_s12 = sadd.s32 1, %s1510_s12  }
 0x2f8   : > { %p10_p4 = scmp.ge.s32.totalorder %s13_s12, 4  }
 0x2fa   :  { %12 = sbr.rel (!%p10_p4) target bundleno = 1 (0x1), region = 68 }

</bundles_post_ra>
